<compile_context>
chip_gen: v7x
topology: tpu7x:2x2x1
jax: 0.10.0
libtpu: 0.0.40
codegen_flags: <defaults>
</compile_context>

<pallas_src>
import functools

import jax
import jax.numpy as jnp
from jax.experimental import pallas as pl
from jax.experimental.pallas import tpu as pltpu


# ---------------------------------------------------------------------------
# Fused Pallas kernel:  (cout,K) @ (K,M)  + bias  [+ InstanceNorm] [+ReLU|tanh] [+skip]
#   one grid step == one image (batch axis is the parallel grid axis)
# ---------------------------------------------------------------------------
def _conv_fused_kernel(*refs, norm, relu, act_tanh, add_skip, eps):
    if add_skip:
        w_ref, b_ref, a_ref, s_ref, o_ref = refs
    else:
        w_ref, b_ref, a_ref, o_ref = refs

    # MXU: bf16 x bf16 -> f32 accumulate.  Result is lane-dense: (cout, M=H*W).
    acc = jnp.dot(w_ref[...], a_ref[0], preferred_element_type=jnp.float32)
    acc = acc + b_ref[...]                                # (cout, 1) broadcasts over lanes

    if norm:                                              # InstanceNorm2d (biased var, eps=1e-5)
        mean = jnp.mean(acc, axis=-1, keepdims=True)
        var = jnp.mean((acc - mean) ** 2, axis=-1, keepdims=True)
        acc = (acc - mean) * jax.lax.rsqrt(var + eps)
    if relu:
        acc = jnp.maximum(acc, 0.0)
    if act_tanh:
        acc = jnp.tanh(acc)
    if add_skip:                                          # ResnetBlock: x + conv_block(x)
        acc = acc + s_ref[0]

    o_ref[0] = acc


# ---------------------------------------------------------------------------
# Conv glue: padding / tap gather (im2col, transposed) stay in plain JAX;
# the matmul + epilogue runs in the fused Pallas kernel above.
# ---------------------------------------------------------------------------
def _reflect_pad(x_nchw, p):
    return jnp.pad(x_nchw, ((0, 0), (0, 0), (p, p), (p, p)), mode="reflect")


def _zero_pad(x_nchw, p):
    return jnp.pad(x_nchw, ((0, 0), (0, 0), (p, p), (p, p)))


def _dilate(x_nchw, s):
    """Insert (s-1) zeros between spatial elements (transpose-conv upsampling)."""
    N, C, H, W = x_nchw.shape
    out = jnp.zeros((N, C, (H - 1) * s + 1, (W - 1) * s + 1), x_nchw.dtype)
    return out.at[:, :, ::s, ::s].set(x_nchw)


def _im2col_T(x_nchw, kh, kw, stride=1, dilation=1):
    """Returns A^T of shape (N, K, M) with K=(tap, cin) ordering, M = Ho*Wo."""
    N, C, H, W = x_nchw.shape
    Ho = (H - (kh - 1) * dilation - 1) // stride + 1
    Wo = (W - (kw - 1) * dilation - 1) // stride + 1
    taps = []
    for i in range(kh):
        for j in range(kw):
            r0, c0 = i * dilation, j * dilation
            taps.append(x_nchw[:, :, r0:r0 + (Ho - 1) * stride + 1:stride,
                                     c0:c0 + (Wo - 1) * stride + 1:stride])
    a = jnp.stack(taps, axis=1)                         # (N, kh*kw, C, Ho, Wo)
    a = a.reshape(N, kh * kw * C, Ho * Wo)              # (N, K, M)
    return a, Ho, Wo


def conv_fused(x_nchw_padded, w_hwio, bias, *, stride=1, dilation=1,
               norm=False, relu=False, act_tanh=False, skip=None, eps=1e-5):
    """Conv2d (on a pre-padded NCHW input) fused with bias/IN/ReLU/tanh/residual."""
    kh, kw, cin, cout = w_hwio.shape
    N = x_nchw_padded.shape[0]
    a, Ho, Wo = _im2col_T(x_nchw_padded, kh, kw, stride, dilation)
    K = kh * kw * cin
    M = Ho * Wo

    a = a.astype(jnp.bfloat16)                            # bf16 MXU operand
    wt = w_hwio.reshape(K, cout).T.astype(jnp.bfloat16)   # (cout, K) bf16
    b = bias.reshape(cout, 1).astype(jnp.float32)

    add_skip = skip is not None
    kern = functools.partial(_conv_fused_kernel, norm=norm, relu=relu,
                             act_tanh=act_tanh, add_skip=add_skip, eps=eps)

    in_specs = [
        pl.BlockSpec((cout, K), lambda n: (0, 0)),        # weights resident every step
        pl.BlockSpec((cout, 1), lambda n: (0, 0)),        # bias
        pl.BlockSpec((1, K, M), lambda n: (n, 0, 0)),     # im2col^T of image n
    ]
    args = [wt, b, a]
    if add_skip:
        in_specs.append(pl.BlockSpec((1, cout, M), lambda n: (n, 0, 0)))
        args.append(skip.reshape(N, cout, M).astype(jnp.float32))

    y = pl.pallas_call(
        kern,
        out_shape=jax.ShapeDtypeStruct((N, cout, M), jnp.float32),
        grid=(N,),
        in_specs=in_specs,
        out_specs=pl.BlockSpec((1, cout, M), lambda n: (n, 0, 0)),
        compiler_params=pltpu.CompilerParams(
            dimension_semantics=("parallel",)),           # dual-TC on v7x
    )(*args)
    return y.reshape(N, cout, Ho, Wo)                     # NCHW


# ---------------------------------------------------------------------------
# Parameters (deterministic synthetic init)
# ---------------------------------------------------------------------------
def init_params(key, in_ch=4, dim=8, layer_nums=(2, 2, 2)):
    params = {}
    keys = jax.random.split(key, 64)
    kidx = [0]

    def nxt():
        k = keys[kidx[0]]
        kidx[0] += 1
        return k

    def conv_p(name, kh, kw, cin, cout):
        params[name + "_w"] = 0.05 * jax.random.normal(nxt(), (kh, kw, cin, cout), jnp.float32)
        params[name + "_b"] = 0.05 * jax.random.normal(nxt(), (cout,), jnp.float32)

    ch = dim
    conv_p("enc0", 7, 7, in_ch, ch)                       # 7x7 conv after ReflectionPad(3)
    for l in range(layer_nums[0] - 1):                    # 4x4 stride-2 downsamples
        conv_p(f"enc{l + 1}", 4, 4, ch, ch * 2)
        ch *= 2
    for l in range(layer_nums[1]):                        # ResnetBlock(ch, dilation=2)
        conv_p(f"res{l}_a", 3, 3, ch, ch)
        conv_p(f"res{l}_b", 3, 3, ch, ch)
    for l in range(layer_nums[2] - 1):                    # transpose convs (as equiv. conv)
        conv_p(f"dec{l}", 4, 4, ch, ch // 2)
        ch //= 2
    conv_p("final", 7, 7, ch, 3)                          # 7x7 conv -> 3 channels, tanh
    return params


# ---------------------------------------------------------------------------
# Forward pass (matches nn.Sequential structure of ECGenerator); activations NCHW.
# ---------------------------------------------------------------------------
def ec_generator_forward(params, x_nchw, layer_nums=(2, 2, 2)):
    x = x_nchw.astype(jnp.float32)

    # ---- encoder ----
    x = conv_fused(_reflect_pad(x, 3), params["enc0_w"], params["enc0_b"],
                   norm=True, relu=True)
    for l in range(layer_nums[0] - 1):
        x = conv_fused(_zero_pad(x, 1), params[f"enc{l + 1}_w"], params[f"enc{l + 1}_b"],
                       stride=2, norm=True, relu=True)

    # ---- middle: ResnetBlock(ch, dilation=2) ----
    for l in range(layer_nums[1]):
        y = conv_fused(_reflect_pad(x, 2), params[f"res{l}_a_w"], params[f"res{l}_a_b"],
                       dilation=2, norm=True, relu=True)
        x = conv_fused(_reflect_pad(y, 1), params[f"res{l}_b_w"], params[f"res{l}_b_b"],
                       norm=True, skip=x)                 # IN + residual add fused

    # ---- decoder ----
    for l in range(layer_nums[2] - 1):
        # ConvTranspose2d(k=4, s=2, p=1) == zero-dilate by 2, pad k-1-p=2, stride-1 conv
        xd = _zero_pad(_dilate(x, 2), 2)
        x = conv_fused(xd, params[f"dec{l}_w"], params[f"dec{l}_b"],
                       norm=True, relu=True)
    x = conv_fused(_reflect_pad(x, 3), params["final_w"], params["final_b"],
                   act_tanh=True)

    return x                                              # already NCHW


# ---------------------------------------------------------------------------
if __name__ == "__main__":
    key = jax.random.PRNGKey(0)
    pkey, xkey = jax.random.split(key)

    layer_nums = (2, 2, 2)
    params = init_params(pkey, in_ch=4, dim=8, layer_nums=layer_nums)
    x = jax.random.normal(xkey, (2, 4, 16, 16), jnp.float32)   # NCHW, like PyTorch

    fwd = jax.jit(functools.partial(ec_generator_forward, layer_nums=layer_nums))
    out = fwd(params, x)
    jax.block_until_ready(out)

    assert out.shape == (2, 3, 16, 16), out.shape
    assert bool(jnp.all(jnp.isfinite(out)))
    assert bool(jnp.all(jnp.abs(out) <= 1.0))             # tanh output range
    print("KERNEL_OK")
</pallas_src>

<mosaic_0001>
module attributes {stable_mosaic.version = 11 : i64} {
  func.func @_conv_fused_kernel(%arg0: i32, %arg1: memref<8x196xbf16, #tpu.memory_space<vmem>>, %arg2: memref<8x1xf32, #tpu.memory_space<vmem>>, %arg3: memref<1x196x256xbf16, #tpu.memory_space<vmem>>, %arg4: memref<1x8x256xf32, #tpu.memory_space<vmem>>) attributes {dimension_semantics = [#tpu.dimension_semantics<parallel>], iteration_bounds = array<i64: 2>, scalar_prefetch = 0 : i64, scratch_operands = 0 : i64, tpu.core_type = #tpu.core_type<tc>, window_params = [{pipeline_mode = #tpu.pipeline_mode<synchronous>, transform_indices = @transform_0, window_bounds = array<i64: 8, 196>}, {pipeline_mode = #tpu.pipeline_mode<synchronous>, transform_indices = @transform_1, window_bounds = array<i64: 8, 1>}, {transform_indices = @transform_2, window_bounds = array<i64: 1, 196, 256>}, {transform_indices = @transform_3, window_bounds = array<i64: 1, 8, 256>}]} {
    %c0 = arith.constant 0 : index
    %c0_0 = arith.constant 0 : index
    %0 = vector.load %arg1[%c0, %c0_0] : memref<8x196xbf16, #tpu.memory_space<vmem>>, vector<8x196xbf16>
    %c0_1 = arith.constant 0 : index
    %c0_2 = arith.constant 0 : index
    %c0_3 = arith.constant 0 : index
    %1 = vector.load %arg3[%c0_1, %c0_2, %c0_3] : memref<1x196x256xbf16, #tpu.memory_space<vmem>>, vector<1x196x256xbf16>
    %2 = vector.shape_cast %1 : vector<1x196x256xbf16> to vector<196x256xbf16>
    %cst = arith.constant dense<0.000000e+00> : vector<8x256xf32>
    %3 = tpu.matmul %0, %2, %cst {dimension_numbers = #tpu.dot_dimension_numbers<[1], [0], [0], [1], [0, 0, 1, 1], [], []>} : vector<8x196xbf16>, vector<196x256xbf16>, vector<8x256xf32> -> vector<8x256xf32>
    %c0_4 = arith.constant 0 : index
    %c0_5 = arith.constant 0 : index
    %4 = vector.load %arg2[%c0_4, %c0_5] : memref<8x1xf32, #tpu.memory_space<vmem>>, vector<8x1xf32>
    %5 = vector.broadcast %4 : vector<8x1xf32> to vector<8x256xf32>
    %6 = arith.addf %3, %5 : vector<8x256xf32>
    %cst_6 = arith.constant dense<0.000000e+00> : vector<8xf32>
    %7 = vector.multi_reduction <add>, %6, %cst_6 [1] : vector<8x256xf32> to vector<8xf32>
    %8 = vector.shape_cast %7 : vector<8xf32> to vector<8x1xf32>
    %cst_7 = arith.constant 2.560000e+02 : f32
    %9 = vector.broadcast %cst_7 : f32 to vector<8x1xf32>
    %10 = arith.divf %8, %9 : vector<8x1xf32>
    %11 = vector.broadcast %10 : vector<8x1xf32> to vector<8x256xf32>
    %12 = arith.subf %6, %11 : vector<8x256xf32>
    %13 = arith.mulf %12, %12 : vector<8x256xf32>
    %cst_8 = arith.constant dense<0.000000e+00> : vector<8xf32>
    %14 = vector.multi_reduction <add>, %13, %cst_8 [1] : vector<8x256xf32> to vector<8xf32>
    %15 = vector.shape_cast %14 : vector<8xf32> to vector<8x1xf32>
    %cst_9 = arith.constant 2.560000e+02 : f32
    %16 = vector.broadcast %cst_9 : f32 to vector<8x1xf32>
    %17 = arith.divf %15, %16 : vector<8x1xf32>
    %18 = vector.broadcast %10 : vector<8x1xf32> to vector<8x256xf32>
    %19 = arith.subf %6, %18 : vector<8x256xf32>
    %cst_10 = arith.constant 9.99999974E-6 : f32
    %20 = vector.broadcast %cst_10 : f32 to vector<8x1xf32>
    %21 = arith.addf %17, %20 : vector<8x1xf32>
    %22 = math.rsqrt %21 : vector<8x1xf32>
    %23 = vector.broadcast %22 : vector<8x1xf32> to vector<8x256xf32>
    %24 = arith.mulf %19, %23 : vector<8x256xf32>
    %cst_11 = arith.constant 0.000000e+00 : f32
    %25 = vector.broadcast %cst_11 : f32 to vector<8x256xf32>
    %26 = arith.maximumf %24, %25 : vector<8x256xf32>
    %c0_12 = arith.constant 0 : index
    %c0_13 = arith.constant 0 : index
    %c0_14 = arith.constant 0 : index
    %27 = vector.load %arg4[%c0_12, %c0_13, %c0_14] : memref<1x8x256xf32, #tpu.memory_space<vmem>>, vector<1x8x256xf32>
    %28 = vector.shape_cast %27 : vector<1x8x256xf32> to vector<8x256xf32>
    %29 = vector.shape_cast %26 : vector<8x256xf32> to vector<1x8x256xf32>
    tpu.vector_store %arg4[%c0_12, %c0_13, %c0_14], %29 {strides = array<i32>} : memref<1x8x256xf32, #tpu.memory_space<vmem>>, vector<1x8x256xf32>,
    return
  }
  func.func @transform_0(%arg0: i32) -> (i32, i32) {
    %c0_i32 = arith.constant 0 : i32
    %c0_i32_0 = arith.constant 0 : i32
    %c0_i32_1 = arith.constant 0 : i32
    return %c0_i32, %c0_i32_0 : i32, i32
  }
  func.func @transform_1(%arg0: i32) -> (i32, i32) {
    %c0_i32 = arith.constant 0 : i32
    %c0_i32_0 = arith.constant 0 : i32
    %c0_i32_1 = arith.constant 0 : i32
    return %c0_i32, %c0_i32_0 : i32, i32
  }
  func.func @transform_2(%arg0: i32) -> (i32, i32, i32) {
    %c0_i32 = arith.constant 0 : i32
    %c0_i32_0 = arith.constant 0 : i32
    %c0_i32_1 = arith.constant 0 : i32
    return %arg0, %c0_i32, %c0_i32_0 : i32, i32, i32
  }
  func.func @transform_3(%arg0: i32) -> (i32, i32, i32) {
    %c0_i32 = arith.constant 0 : i32
    %c0_i32_0 = arith.constant 0 : i32
    %c0_i32_1 = arith.constant 0 : i32
    return %arg0, %c0_i32, %c0_i32_0 : i32, i32, i32
  }
}

module attributes {stable_mosaic.version = 11 : i64} {
  func.func @_conv_fused_kernel(%arg0: i32, %arg1: memref<16x128xbf16, #tpu.memory_space<vmem>>, %arg2: memref<16x1xf32, #tpu.memory_space<vmem>>, %arg3: memref<1x128x64xbf16, #tpu.memory_space<vmem>>, %arg4: memref<1x16x64xf32, #tpu.memory_space<vmem>>) attributes {dimension_semantics = [#tpu.dimension_semantics<parallel>], iteration_bounds = array<i64: 2>, scalar_prefetch = 0 : i64, scratch_operands = 0 : i64, tpu.core_type = #tpu.core_type<tc>, window_params = [{pipeline_mode = #tpu.pipeline_mode<synchronous>, transform_indices = @transform_0, window_bounds = array<i64: 16, 128>}, {pipeline_mode = #tpu.pipeline_mode<synchronous>, transform_indices = @transform_1, window_bounds = array<i64: 16, 1>}, {transform_indices = @transform_2, window_bounds = array<i64: 1, 128, 64>}, {transform_indices = @transform_3, window_bounds = array<i64: 1, 16, 64>}]} {
    %c0 = arith.constant 0 : index
    %c0_0 = arith.constant 0 : index
    %0 = vector.load %arg1[%c0, %c0_0] : memref<16x128xbf16, #tpu.memory_space<vmem>>, vector<16x128xbf16>
    %c0_1 = arith.constant 0 : index
    %c0_2 = arith.constant 0 : index
    %c0_3 = arith.constant 0 : index
    %1 = vector.load %arg3[%c0_1, %c0_2, %c0_3] : memref<1x128x64xbf16, #tpu.memory_space<vmem>>, vector<1x128x64xbf16>
    %2 = vector.shape_cast %1 : vector<1x128x64xbf16> to vector<128x64xbf16>
    %cst = arith.constant dense<0.000000e+00> : vector<16x64xf32>
    %3 = tpu.matmul %0, %2, %cst {dimension_numbers = #tpu.dot_dimension_numbers<[1], [0], [0], [1], [0, 0, 1, 1], [], []>} : vector<16x128xbf16>, vector<128x64xbf16>, vector<16x64xf32> -> vector<16x64xf32>
    %c0_4 = arith.constant 0 : index
    %c0_5 = arith.constant 0 : index
    %4 = vector.load %arg2[%c0_4, %c0_5] : memref<16x1xf32, #tpu.memory_space<vmem>>, vector<16x1xf32>
    %5 = vector.broadcast %4 : vector<16x1xf32> to vector<16x64xf32>
    %6 = arith.addf %3, %5 : vector<16x64xf32>
    %cst_6 = arith.constant dense<0.000000e+00> : vector<16xf32>
    %7 = vector.multi_reduction <add>, %6, %cst_6 [1] : vector<16x64xf32> to vector<16xf32>
    %8 = vector.shape_cast %7 : vector<16xf32> to vector<16x1xf32>
    %cst_7 = arith.constant 6.400000e+01 : f32
    %9 = vector.broadcast %cst_7 : f32 to vector<16x1xf32>
    %10 = arith.divf %8, %9 : vector<16x1xf32>
    %11 = vector.broadcast %10 : vector<16x1xf32> to vector<16x64xf32>
    %12 = arith.subf %6, %11 : vector<16x64xf32>
    %13 = arith.mulf %12, %12 : vector<16x64xf32>
    %cst_8 = arith.constant dense<0.000000e+00> : vector<16xf32>
    %14 = vector.multi_reduction <add>, %13, %cst_8 [1] : vector<16x64xf32> to vector<16xf32>
    %15 = vector.shape_cast %14 : vector<16xf32> to vector<16x1xf32>
    %cst_9 = arith.constant 6.400000e+01 : f32
    %16 = vector.broadcast %cst_9 : f32 to vector<16x1xf32>
    %17 = arith.divf %15, %16 : vector<16x1xf32>
    %18 = vector.broadcast %10 : vector<16x1xf32> to vector<16x64xf32>
    %19 = arith.subf %6, %18 : vector<16x64xf32>
    %cst_10 = arith.constant 9.99999974E-6 : f32
    %20 = vector.broadcast %cst_10 : f32 to vector<16x1xf32>
    %21 = arith.addf %17, %20 : vector<16x1xf32>
    %22 = math.rsqrt %21 : vector<16x1xf32>
    %23 = vector.broadcast %22 : vector<16x1xf32> to vector<16x64xf32>
    %24 = arith.mulf %19, %23 : vector<16x64xf32>
    %cst_11 = arith.constant 0.000000e+00 : f32
    %25 = vector.broadcast %cst_11 : f32 to vector<16x64xf32>
    %26 = arith.maximumf %24, %25 : vector<16x64xf32>
    %c0_12 = arith.constant 0 : index
    %c0_13 = arith.constant 0 : index
    %c0_14 = arith.constant 0 : index
    %27 = vector.load %arg4[%c0_12, %c0_13, %c0_14] : memref<1x16x64xf32, #tpu.memory_space<vmem>>, vector<1x16x64xf32>
    %28 = vector.shape_cast %27 : vector<1x16x64xf32> to vector<16x64xf32>
    %29 = vector.shape_cast %26 : vector<16x64xf32> to vector<1x16x64xf32>
    tpu.vector_store %arg4[%c0_12, %c0_13, %c0_14], %29 {strides = array<i32>} : memref<1x16x64xf32, #tpu.memory_space<vmem>>, vector<1x16x64xf32>,
    return
  }
  func.func @transform_0(%arg0: i32) -> (i32, i32) {
    %c0_i32 = arith.constant 0 : i32
    %c0_i32_0 = arith.constant 0 : i32
    %c0_i32_1 = arith.constant 0 : i32
    return %c0_i32, %c0_i32_0 : i32, i32
  }
  func.func @transform_1(%arg0: i32) -> (i32, i32) {
    %c0_i32 = arith.constant 0 : i32
    %c0_i32_0 = arith.constant 0 : i32
    %c0_i32_1 = arith.constant 0 : i32
    return %c0_i32, %c0_i32_0 : i32, i32
  }
  func.func @transform_2(%arg0: i32) -> (i32, i32, i32) {
    %c0_i32 = arith.constant 0 : i32
    %c0_i32_0 = arith.constant 0 : i32
    %c0_i32_1 = arith.constant 0 : i32
    return %arg0, %c0_i32, %c0_i32_0 : i32, i32, i32
  }
  func.func @transform_3(%arg0: i32) -> (i32, i32, i32) {
    %c0_i32 = arith.constant 0 : i32
    %c0_i32_0 = arith.constant 0 : i32
    %c0_i32_1 = arith.constant 0 : i32
    return %arg0, %c0_i32, %c0_i32_0 : i32, i32, i32
  }
}

module attributes {stable_mosaic.version = 11 : i64} {
  func.func @_conv_fused_kernel(%arg0: i32, %arg1: memref<16x144xbf16, #tpu.memory_space<vmem>>, %arg2: memref<16x1xf32, #tpu.memory_space<vmem>>, %arg3: memref<1x144x64xbf16, #tpu.memory_space<vmem>>, %arg4: memref<1x16x64xf32, #tpu.memory_space<vmem>>) attributes {dimension_semantics = [#tpu.dimension_semantics<parallel>], iteration_bounds = array<i64: 2>, scalar_prefetch = 0 : i64, scratch_operands = 0 : i64, tpu.core_type = #tpu.core_type<tc>, window_params = [{pipeline_mode = #tpu.pipeline_mode<synchronous>, transform_indices = @transform_0, window_bounds = array<i64: 16, 144>}, {pipeline_mode = #tpu.pipeline_mode<synchronous>, transform_indices = @transform_1, window_bounds = array<i64: 16, 1>}, {transform_indices = @transform_2, window_bounds = array<i64: 1, 144, 64>}, {transform_indices = @transform_3, window_bounds = array<i64: 1, 16, 64>}]} {
    %c0 = arith.constant 0 : index
    %c0_0 = arith.constant 0 : index
    %0 = vector.load %arg1[%c0, %c0_0] : memref<16x144xbf16, #tpu.memory_space<vmem>>, vector<16x144xbf16>
    %c0_1 = arith.constant 0 : index
    %c0_2 = arith.constant 0 : index
    %c0_3 = arith.constant 0 : index
    %1 = vector.load %arg3[%c0_1, %c0_2, %c0_3] : memref<1x144x64xbf16, #tpu.memory_space<vmem>>, vector<1x144x64xbf16>
    %2 = vector.shape_cast %1 : vector<1x144x64xbf16> to vector<144x64xbf16>
    %cst = arith.constant dense<0.000000e+00> : vector<16x64xf32>
    %3 = tpu.matmul %0, %2, %cst {dimension_numbers = #tpu.dot_dimension_numbers<[1], [0], [0], [1], [0, 0, 1, 1], [], []>} : vector<16x144xbf16>, vector<144x64xbf16>, vector<16x64xf32> -> vector<16x64xf32>
    %c0_4 = arith.constant 0 : index
    %c0_5 = arith.constant 0 : index
    %4 = vector.load %arg2[%c0_4, %c0_5] : memref<16x1xf32, #tpu.memory_space<vmem>>, vector<16x1xf32>
    %5 = vector.broadcast %4 : vector<16x1xf32> to vector<16x64xf32>
    %6 = arith.addf %3, %5 : vector<16x64xf32>
    %cst_6 = arith.constant dense<0.000000e+00> : vector<16xf32>
    %7 = vector.multi_reduction <add>, %6, %cst_6 [1] : vector<16x64xf32> to vector<16xf32>
    %8 = vector.shape_cast %7 : vector<16xf32> to vector<16x1xf32>
    %cst_7 = arith.constant 6.400000e+01 : f32
    %9 = vector.broadcast %cst_7 : f32 to vector<16x1xf32>
    %10 = arith.divf %8, %9 : vector<16x1xf32>
    %11 = vector.broadcast %10 : vector<16x1xf32> to vector<16x64xf32>
    %12 = arith.subf %6, %11 : vector<16x64xf32>
    %13 = arith.mulf %12, %12 : vector<16x64xf32>
    %cst_8 = arith.constant dense<0.000000e+00> : vector<16xf32>
    %14 = vector.multi_reduction <add>, %13, %cst_8 [1] : vector<16x64xf32> to vector<16xf32>
    %15 = vector.shape_cast %14 : vector<16xf32> to vector<16x1xf32>
    %cst_9 = arith.constant 6.400000e+01 : f32
    %16 = vector.broadcast %cst_9 : f32 to vector<16x1xf32>
    %17 = arith.divf %15, %16 : vector<16x1xf32>
    %18 = vector.broadcast %10 : vector<16x1xf32> to vector<16x64xf32>
    %19 = arith.subf %6, %18 : vector<16x64xf32>
    %cst_10 = arith.constant 9.99999974E-6 : f32
    %20 = vector.broadcast %cst_10 : f32 to vector<16x1xf32>
    %21 = arith.addf %17, %20 : vector<16x1xf32>
    %22 = math.rsqrt %21 : vector<16x1xf32>
    %23 = vector.broadcast %22 : vector<16x1xf32> to vector<16x64xf32>
    %24 = arith.mulf %19, %23 : vector<16x64xf32>
    %cst_11 = arith.constant 0.000000e+00 : f32
    %25 = vector.broadcast %cst_11 : f32 to vector<16x64xf32>
    %26 = arith.maximumf %24, %25 : vector<16x64xf32>
    %c0_12 = arith.constant 0 : index
    %c0_13 = arith.constant 0 : index
    %c0_14 = arith.constant 0 : index
    %27 = vector.load %arg4[%c0_12, %c0_13, %c0_14] : memref<1x16x64xf32, #tpu.memory_space<vmem>>, vector<1x16x64xf32>
    %28 = vector.shape_cast %27 : vector<1x16x64xf32> to vector<16x64xf32>
    %29 = vector.shape_cast %26 : vector<16x64xf32> to vector<1x16x64xf32>
    tpu.vector_store %arg4[%c0_12, %c0_13, %c0_14], %29 {strides = array<i32>} : memref<1x16x64xf32, #tpu.memory_space<vmem>>, vector<1x16x64xf32>,
    return
  }
  func.func @transform_0(%arg0: i32) -> (i32, i32) {
    %c0_i32 = arith.constant 0 : i32
    %c0_i32_0 = arith.constant 0 : i32
    %c0_i32_1 = arith.constant 0 : i32
    return %c0_i32, %c0_i32_0 : i32, i32
  }
  func.func @transform_1(%arg0: i32) -> (i32, i32) {
    %c0_i32 = arith.constant 0 : i32
    %c0_i32_0 = arith.constant 0 : i32
    %c0_i32_1 = arith.constant 0 : i32
    return %c0_i32, %c0_i32_0 : i32, i32
  }
  func.func @transform_2(%arg0: i32) -> (i32, i32, i32) {
    %c0_i32 = arith.constant 0 : i32
    %c0_i32_0 = arith.constant 0 : i32
    %c0_i32_1 = arith.constant 0 : i32
    return %arg0, %c0_i32, %c0_i32_0 : i32, i32, i32
  }
  func.func @transform_3(%arg0: i32) -> (i32, i32, i32) {
    %c0_i32 = arith.constant 0 : i32
    %c0_i32_0 = arith.constant 0 : i32
    %c0_i32_1 = arith.constant 0 : i32
    return %arg0, %c0_i32, %c0_i32_0 : i32, i32, i32
  }
}

module attributes {stable_mosaic.version = 11 : i64} {
  func.func @_conv_fused_kernel(%arg0: i32, %arg1: memref<16x144xbf16, #tpu.memory_space<vmem>>, %arg2: memref<16x1xf32, #tpu.memory_space<vmem>>, %arg3: memref<1x144x64xbf16, #tpu.memory_space<vmem>>, %arg4: memref<1x16x64xf32, #tpu.memory_space<vmem>>, %arg5: memref<1x16x64xf32, #tpu.memory_space<vmem>>) attributes {dimension_semantics = [#tpu.dimension_semantics<parallel>], iteration_bounds = array<i64: 2>, scalar_prefetch = 0 : i64, scratch_operands = 0 : i64, tpu.core_type = #tpu.core_type<tc>, window_params = [{pipeline_mode = #tpu.pipeline_mode<synchronous>, transform_indices = @transform_0, window_bounds = array<i64: 16, 144>}, {pipeline_mode = #tpu.pipeline_mode<synchronous>, transform_indices = @transform_1, window_bounds = array<i64: 16, 1>}, {transform_indices = @transform_2, window_bounds = array<i64: 1, 144, 64>}, {transform_indices = @transform_3, window_bounds = array<i64: 1, 16, 64>}, {transform_indices = @transform_4, window_bounds = array<i64: 1, 16, 64>}]} {
    %c0 = arith.constant 0 : index
    %c0_0 = arith.constant 0 : index
    %0 = vector.load %arg1[%c0, %c0_0] : memref<16x144xbf16, #tpu.memory_space<vmem>>, vector<16x144xbf16>
    %c0_1 = arith.constant 0 : index
    %c0_2 = arith.constant 0 : index
    %c0_3 = arith.constant 0 : index
    %1 = vector.load %arg3[%c0_1, %c0_2, %c0_3] : memref<1x144x64xbf16, #tpu.memory_space<vmem>>, vector<1x144x64xbf16>
    %2 = vector.shape_cast %1 : vector<1x144x64xbf16> to vector<144x64xbf16>
    %cst = arith.constant dense<0.000000e+00> : vector<16x64xf32>
    %3 = tpu.matmul %0, %2, %cst {dimension_numbers = #tpu.dot_dimension_numbers<[1], [0], [0], [1], [0, 0, 1, 1], [], []>} : vector<16x144xbf16>, vector<144x64xbf16>, vector<16x64xf32> -> vector<16x64xf32>
    %c0_4 = arith.constant 0 : index
    %c0_5 = arith.constant 0 : index
    %4 = vector.load %arg2[%c0_4, %c0_5] : memref<16x1xf32, #tpu.memory_space<vmem>>, vector<16x1xf32>
    %5 = vector.broadcast %4 : vector<16x1xf32> to vector<16x64xf32>
    %6 = arith.addf %3, %5 : vector<16x64xf32>
    %cst_6 = arith.constant dense<0.000000e+00> : vector<16xf32>
    %7 = vector.multi_reduction <add>, %6, %cst_6 [1] : vector<16x64xf32> to vector<16xf32>
    %8 = vector.shape_cast %7 : vector<16xf32> to vector<16x1xf32>
    %cst_7 = arith.constant 6.400000e+01 : f32
    %9 = vector.broadcast %cst_7 : f32 to vector<16x1xf32>
    %10 = arith.divf %8, %9 : vector<16x1xf32>
    %11 = vector.broadcast %10 : vector<16x1xf32> to vector<16x64xf32>
    %12 = arith.subf %6, %11 : vector<16x64xf32>
    %13 = arith.mulf %12, %12 : vector<16x64xf32>
    %cst_8 = arith.constant dense<0.000000e+00> : vector<16xf32>
    %14 = vector.multi_reduction <add>, %13, %cst_8 [1] : vector<16x64xf32> to vector<16xf32>
    %15 = vector.shape_cast %14 : vector<16xf32> to vector<16x1xf32>
    %cst_9 = arith.constant 6.400000e+01 : f32
    %16 = vector.broadcast %cst_9 : f32 to vector<16x1xf32>
    %17 = arith.divf %15, %16 : vector<16x1xf32>
    %18 = vector.broadcast %10 : vector<16x1xf32> to vector<16x64xf32>
    %19 = arith.subf %6, %18 : vector<16x64xf32>
    %cst_10 = arith.constant 9.99999974E-6 : f32
    %20 = vector.broadcast %cst_10 : f32 to vector<16x1xf32>
    %21 = arith.addf %17, %20 : vector<16x1xf32>
    %22 = math.rsqrt %21 : vector<16x1xf32>
    %23 = vector.broadcast %22 : vector<16x1xf32> to vector<16x64xf32>
    %24 = arith.mulf %19, %23 : vector<16x64xf32>
    %c0_11 = arith.constant 0 : index
    %c0_12 = arith.constant 0 : index
    %c0_13 = arith.constant 0 : index
    %25 = vector.load %arg4[%c0_11, %c0_12, %c0_13] : memref<1x16x64xf32, #tpu.memory_space<vmem>>, vector<1x16x64xf32>
    %26 = vector.shape_cast %25 : vector<1x16x64xf32> to vector<16x64xf32>
    %27 = arith.addf %24, %26 : vector<16x64xf32>
    %c0_14 = arith.constant 0 : index
    %c0_15 = arith.constant 0 : index
    %c0_16 = arith.constant 0 : index
    %28 = vector.load %arg5[%c0_14, %c0_15, %c0_16] : memref<1x16x64xf32, #tpu.memory_space<vmem>>, vector<1x16x64xf32>
    %29 = vector.shape_cast %28 : vector<1x16x64xf32> to vector<16x64xf32>
    %30 = vector.shape_cast %27 : vector<16x64xf32> to vector<1x16x64xf32>
    tpu.vector_store %arg5[%c0_14, %c0_15, %c0_16], %30 {strides = array<i32>} : memref<1x16x64xf32, #tpu.memory_space<vmem>>, vector<1x16x64xf32>,
    return
  }
  func.func @transform_0(%arg0: i32) -> (i32, i32) {
    %c0_i32 = arith.constant 0 : i32
    %c0_i32_0 = arith.constant 0 : i32
    %c0_i32_1 = arith.constant 0 : i32
    return %c0_i32, %c0_i32_0 : i32, i32
  }
  func.func @transform_1(%arg0: i32) -> (i32, i32) {
    %c0_i32 = arith.constant 0 : i32
    %c0_i32_0 = arith.constant 0 : i32
    %c0_i32_1 = arith.constant 0 : i32
    return %c0_i32, %c0_i32_0 : i32, i32
  }
  func.func @transform_2(%arg0: i32) -> (i32, i32, i32) {
    %c0_i32 = arith.constant 0 : i32
    %c0_i32_0 = arith.constant 0 : i32
    %c0_i32_1 = arith.constant 0 : i32
    return %arg0, %c0_i32, %c0_i32_0 : i32, i32, i32
  }
  func.func @transform_3(%arg0: i32) -> (i32, i32, i32) {
    %c0_i32 = arith.constant 0 : i32
    %c0_i32_0 = arith.constant 0 : i32
    %c0_i32_1 = arith.constant 0 : i32
    return %arg0, %c0_i32, %c0_i32_0 : i32, i32, i32
  }
  func.func @transform_4(%arg0: i32) -> (i32, i32, i32) {
    %c0_i32 = arith.constant 0 : i32
    %c0_i32_0 = arith.constant 0 : i32
    %c0_i32_1 = arith.constant 0 : i32
    return %arg0, %c0_i32, %c0_i32_0 : i32, i32, i32
  }
}

module attributes {stable_mosaic.version = 11 : i64} {
  func.func @_conv_fused_kernel(%arg0: i32, %arg1: memref<8x256xbf16, #tpu.memory_space<vmem>>, %arg2: memref<8x1xf32, #tpu.memory_space<vmem>>, %arg3: memref<1x256x256xbf16, #tpu.memory_space<vmem>>, %arg4: memref<1x8x256xf32, #tpu.memory_space<vmem>>) attributes {dimension_semantics = [#tpu.dimension_semantics<parallel>], iteration_bounds = array<i64: 2>, scalar_prefetch = 0 : i64, scratch_operands = 0 : i64, tpu.core_type = #tpu.core_type<tc>, window_params = [{pipeline_mode = #tpu.pipeline_mode<synchronous>, transform_indices = @transform_0, window_bounds = array<i64: 8, 256>}, {pipeline_mode = #tpu.pipeline_mode<synchronous>, transform_indices = @transform_1, window_bounds = array<i64: 8, 1>}, {transform_indices = @transform_2, window_bounds = array<i64: 1, 256, 256>}, {transform_indices = @transform_3, window_bounds = array<i64: 1, 8, 256>}]} {
    %c0 = arith.constant 0 : index
    %c0_0 = arith.constant 0 : index
    %0 = vector.load %arg1[%c0, %c0_0] : memref<8x256xbf16, #tpu.memory_space<vmem>>, vector<8x256xbf16>
    %c0_1 = arith.constant 0 : index
    %c0_2 = arith.constant 0 : index
    %c0_3 = arith.constant 0 : index
    %1 = vector.load %arg3[%c0_1, %c0_2, %c0_3] : memref<1x256x256xbf16, #tpu.memory_space<vmem>>, vector<1x256x256xbf16>
    %2 = vector.shape_cast %1 : vector<1x256x256xbf16> to vector<256x256xbf16>
    %cst = arith.constant dense<0.000000e+00> : vector<8x256xf32>
    %3 = tpu.matmul %0, %2, %cst {dimension_numbers = #tpu.dot_dimension_numbers<[1], [0], [0], [1], [0, 0, 1, 1], [], []>} : vector<8x256xbf16>, vector<256x256xbf16>, vector<8x256xf32> -> vector<8x256xf32>
    %c0_4 = arith.constant 0 : index
    %c0_5 = arith.constant 0 : index
    %4 = vector.load %arg2[%c0_4, %c0_5] : memref<8x1xf32, #tpu.memory_space<vmem>>, vector<8x1xf32>
    %5 = vector.broadcast %4 : vector<8x1xf32> to vector<8x256xf32>
    %6 = arith.addf %3, %5 : vector<8x256xf32>
    %cst_6 = arith.constant dense<0.000000e+00> : vector<8xf32>
    %7 = vector.multi_reduction <add>, %6, %cst_6 [1] : vector<8x256xf32> to vector<8xf32>
    %8 = vector.shape_cast %7 : vector<8xf32> to vector<8x1xf32>
    %cst_7 = arith.constant 2.560000e+02 : f32
    %9 = vector.broadcast %cst_7 : f32 to vector<8x1xf32>
    %10 = arith.divf %8, %9 : vector<8x1xf32>
    %11 = vector.broadcast %10 : vector<8x1xf32> to vector<8x256xf32>
    %12 = arith.subf %6, %11 : vector<8x256xf32>
    %13 = arith.mulf %12, %12 : vector<8x256xf32>
    %cst_8 = arith.constant dense<0.000000e+00> : vector<8xf32>
    %14 = vector.multi_reduction <add>, %13, %cst_8 [1] : vector<8x256xf32> to vector<8xf32>
    %15 = vector.shape_cast %14 : vector<8xf32> to vector<8x1xf32>
    %cst_9 = arith.constant 2.560000e+02 : f32
    %16 = vector.broadcast %cst_9 : f32 to vector<8x1xf32>
    %17 = arith.divf %15, %16 : vector<8x1xf32>
    %18 = vector.broadcast %10 : vector<8x1xf32> to vector<8x256xf32>
    %19 = arith.subf %6, %18 : vector<8x256xf32>
    %cst_10 = arith.constant 9.99999974E-6 : f32
    %20 = vector.broadcast %cst_10 : f32 to vector<8x1xf32>
    %21 = arith.addf %17, %20 : vector<8x1xf32>
    %22 = math.rsqrt %21 : vector<8x1xf32>
    %23 = vector.broadcast %22 : vector<8x1xf32> to vector<8x256xf32>
    %24 = arith.mulf %19, %23 : vector<8x256xf32>
    %cst_11 = arith.constant 0.000000e+00 : f32
    %25 = vector.broadcast %cst_11 : f32 to vector<8x256xf32>
    %26 = arith.maximumf %24, %25 : vector<8x256xf32>
    %c0_12 = arith.constant 0 : index
    %c0_13 = arith.constant 0 : index
    %c0_14 = arith.constant 0 : index
    %27 = vector.load %arg4[%c0_12, %c0_13, %c0_14] : memref<1x8x256xf32, #tpu.memory_space<vmem>>, vector<1x8x256xf32>
    %28 = vector.shape_cast %27 : vector<1x8x256xf32> to vector<8x256xf32>
    %29 = vector.shape_cast %26 : vector<8x256xf32> to vector<1x8x256xf32>
    tpu.vector_store %arg4[%c0_12, %c0_13, %c0_14], %29 {strides = array<i32>} : memref<1x8x256xf32, #tpu.memory_space<vmem>>, vector<1x8x256xf32>,
    return
  }
  func.func @transform_0(%arg0: i32) -> (i32, i32) {
    %c0_i32 = arith.constant 0 : i32
    %c0_i32_0 = arith.constant 0 : i32
    %c0_i32_1 = arith.constant 0 : i32
    return %c0_i32, %c0_i32_0 : i32, i32
  }
  func.func @transform_1(%arg0: i32) -> (i32, i32) {
    %c0_i32 = arith.constant 0 : i32
    %c0_i32_0 = arith.constant 0 : i32
    %c0_i32_1 = arith.constant 0 : i32
    return %c0_i32, %c0_i32_0 : i32, i32
  }
  func.func @transform_2(%arg0: i32) -> (i32, i32, i32) {
    %c0_i32 = arith.constant 0 : i32
    %c0_i32_0 = arith.constant 0 : i32
    %c0_i32_1 = arith.constant 0 : i32
    return %arg0, %c0_i32, %c0_i32_0 : i32, i32, i32
  }
  func.func @transform_3(%arg0: i32) -> (i32, i32, i32) {
    %c0_i32 = arith.constant 0 : i32
    %c0_i32_0 = arith.constant 0 : i32
    %c0_i32_1 = arith.constant 0 : i32
    return %arg0, %c0_i32, %c0_i32_0 : i32, i32, i32
  }
}

module attributes {stable_mosaic.version = 11 : i64} {
  func.func @_conv_fused_kernel(%arg0: i32, %arg1: memref<3x392xbf16, #tpu.memory_space<vmem>>, %arg2: memref<3x1xf32, #tpu.memory_space<vmem>>, %arg3: memref<1x392x256xbf16, #tpu.memory_space<vmem>>, %arg4: memref<1x3x256xf32, #tpu.memory_space<vmem>>) attributes {dimension_semantics = [#tpu.dimension_semantics<parallel>], iteration_bounds = array<i64: 2>, scalar_prefetch = 0 : i64, scratch_operands = 0 : i64, tpu.core_type = #tpu.core_type<tc>, window_params = [{pipeline_mode = #tpu.pipeline_mode<synchronous>, transform_indices = @transform_0, window_bounds = array<i64: 3, 392>}, {pipeline_mode = #tpu.pipeline_mode<synchronous>, transform_indices = @transform_1, window_bounds = array<i64: 3, 1>}, {transform_indices = @transform_2, window_bounds = array<i64: 1, 392, 256>}, {transform_indices = @transform_3, window_bounds = array<i64: 1, 3, 256>}]} {
    %c0 = arith.constant 0 : index
    %c0_0 = arith.constant 0 : index
    %0 = vector.load %arg1[%c0, %c0_0] : memref<3x392xbf16, #tpu.memory_space<vmem>>, vector<3x392xbf16>
    %c0_1 = arith.constant 0 : index
    %c0_2 = arith.constant 0 : index
    %c0_3 = arith.constant 0 : index
    %1 = vector.load %arg3[%c0_1, %c0_2, %c0_3] : memref<1x392x256xbf16, #tpu.memory_space<vmem>>, vector<1x392x256xbf16>
    %2 = vector.shape_cast %1 : vector<1x392x256xbf16> to vector<392x256xbf16>
    %cst = arith.constant dense<0.000000e+00> : vector<3x256xf32>
    %3 = tpu.matmul %0, %2, %cst {dimension_numbers = #tpu.dot_dimension_numbers<[1], [0], [0], [1], [0, 0, 1, 1], [], []>} : vector<3x392xbf16>, vector<392x256xbf16>, vector<3x256xf32> -> vector<3x256xf32>
    %c0_4 = arith.constant 0 : index
    %c0_5 = arith.constant 0 : index
    %4 = vector.load %arg2[%c0_4, %c0_5] : memref<3x1xf32, #tpu.memory_space<vmem>>, vector<3x1xf32>
    %5 = vector.broadcast %4 : vector<3x1xf32> to vector<3x256xf32>
    %6 = arith.addf %3, %5 : vector<3x256xf32>
    %7 = math.tanh %6 : vector<3x256xf32>
    %c0_6 = arith.constant 0 : index
    %c0_7 = arith.constant 0 : index
    %c0_8 = arith.constant 0 : index
    %8 = vector.load %arg4[%c0_6, %c0_7, %c0_8] : memref<1x3x256xf32, #tpu.memory_space<vmem>>, vector<1x3x256xf32>
    %9 = vector.shape_cast %8 : vector<1x3x256xf32> to vector<3x256xf32>
    %10 = vector.shape_cast %7 : vector<3x256xf32> to vector<1x3x256xf32>
    tpu.vector_store %arg4[%c0_6, %c0_7, %c0_8], %10 {strides = array<i32>} : memref<1x3x256xf32, #tpu.memory_space<vmem>>, vector<1x3x256xf32>,
    return
  }
  func.func @transform_0(%arg0: i32) -> (i32, i32) {
    %c0_i32 = arith.constant 0 : i32
    %c0_i32_0 = arith.constant 0 : i32
    %c0_i32_1 = arith.constant 0 : i32
    return %c0_i32, %c0_i32_0 : i32, i32
  }
  func.func @transform_1(%arg0: i32) -> (i32, i32) {
    %c0_i32 = arith.constant 0 : i32
    %c0_i32_0 = arith.constant 0 : i32
    %c0_i32_1 = arith.constant 0 : i32
    return %c0_i32, %c0_i32_0 : i32, i32
  }
  func.func @transform_2(%arg0: i32) -> (i32, i32, i32) {
    %c0_i32 = arith.constant 0 : i32
    %c0_i32_0 = arith.constant 0 : i32
    %c0_i32_1 = arith.constant 0 : i32
    return %arg0, %c0_i32, %c0_i32_0 : i32, i32, i32
  }
  func.func @transform_3(%arg0: i32) -> (i32, i32, i32) {
    %c0_i32 = arith.constant 0 : i32
    %c0_i32_0 = arith.constant 0 : i32
    %c0_i32_1 = arith.constant 0 : i32
    return %arg0, %c0_i32, %c0_i32_0 : i32, i32, i32
  }
}

</mosaic_0001>

<bundles_post_ra>
// kernel: ec_generator_forward.8
= control target key start
LH: loop header
LB: loop body
LE: loop exit
PB: predicated region body
PF: predicated region fallthrough
CT: control target
= control target key end

     0   :  { %s586_s12 = smov 0   ;;  %s646_s0 = inlined_call_operand.vmem [shape: bf16[8,196], index: 0, kind: input, shape index: {}]   ;;  %s647_s1 = inlined_call_operand.vmem [shape: f32[8,1], index: 1, kind: input, shape index: {}]   ;;  %s648_s2 = inlined_call_operand.vmem [shape: bf16[2,196,256], index: 2, kind: input, shape index: {}]   ;;  %s649_s3 = inlined_call_operand.vmem [shape: f32[2,8,256], index: 3, kind: output, shape index: {}]  }
   0x1 LB: > { %s463_s13 = sadd.s32 4294967295, %s563_s12   ;;  %p467_p0 = scmp.ge.s32.totalorder %s563_s12, 1  ;;  %s563_s12 = sphi %s586_s12, %s13_s12  }
   0x2   : > { %p137_p1 = scmp.lt.s32.totalorder %s563_s12, 3 }
   0x4   : > { %p138_p2 = pnand %p467_p0, %p137_p1 }
   0x5   : > { %p161_p3 = scmp.lt.s32.totalorder (!%p138_p2), %s463_s13, 1  ;;  %v597_v0 = vld [vmem:[%s646_s0] sm:$0xff] (!%p138_p2)  ;;  %vm335_vm0 = vcmask (!%p138_p2), 556032   ;;  %v565_v3 = vmov (!%p138_p2), 0   ;;  %vm339_vm1 = vcmask (!%p138_p2), 1041408  }
   0x6   : > { %141 = sbr.rel (%p138_p2) target bundleno = 599 (0x257), region = 32  ;;  %v198_v1 = vld [vmem:[%s647_s1] sm:$0xff] (!%p138_p2)  ;;  %v472_v2 = vcombine.high (!%p138_p2), %v597_v0, %v597_v0  ;;  %514 = vset.pattern.permute.xlu0 (!%p138_p2), %v565_v3  ;;  %v471_v32 = vcombine.low (!%p138_p2), %v597_v0, %v597_v0 }
   0x7   : > { %201 = vperm.xlu0 (!%p138_p2), %514, %v198_v1  }
   0x8   : > { %500 = vmatprep.mubr.msk.bf16.mxu0 (!%p138_p2), %vm335_vm0, %v472_v2 }
   0xd   : > { %s651_s13 = smov (!%p161_p3, %s463_s13), 1 }
   0xe   : > { %s504_s18 = smul.u32 200, %s651_s13  ;;  %s503_s22 = sshll.u32 %s651_s13, 4 }
   0xf   : > { %s170_s25 = scalar_lea.vmem %s649_s3, %s503_s22 }
  0x10   : > { %s610_s21 = scalar_lea.vmem %s648_s2, %s504_s18 }
  0x11   : > { %v515_v4 = vld [vmem:[%s610_s21 + $0x4] ss:$8 sps:$4 sm:$0xff]   ;;  %v517_v5 = vld [vmem:[%s610_s21] ss:$8 sps:$4 sm:$0xff]   ;;  %v518_v6 = vld [vmem:[%s610_s21 + $0x14] ss:$8 sps:$4 sm:$0xff]  }
  0x12   : > { %346 = vmatprep.subr.bf16.mxu0 %v515_v4  ;;  %v520_v7 = vld [vmem:[%s610_s21 + $0x10] ss:$8 sps:$4 sm:$0xff]   ;;  %v521_v8 = vld [vmem:[%s610_s21 + $0x24] ss:$8 sps:$4 sm:$0xff]   ;;  %v523_v9 = vld [vmem:[%s610_s21 + $0x20] ss:$8 sps:$4 sm:$0xff]  }
  0x13   : > { %347 = vmatpush1.bf16.msra.mxu0 %v517_v5  ;;  %v524_v10 = vld [vmem:[%s610_s21 + $0x34] ss:$8 sps:$4 sm:$0xff]   ;;  %v526_v11 = vld [vmem:[%s610_s21 + $0x30] ss:$8 sps:$4 sm:$0xff]   ;;  %v527_v12 = vld [vmem:[%s610_s21 + $0x44] ss:$8 sps:$4 sm:$0xff]  }
  0x14   : > { %348 = vmatprep.subr.bf16.mxu0 %v518_v6  ;;  %v529_v13 = vld [vmem:[%s610_s21 + $0x40] ss:$8 sps:$4 sm:$0xff]   ;;  %v530_v14 = vld [vmem:[%s610_s21 + $0x54] ss:$8 sps:$4 sm:$0xff]   ;;  %v532_v15 = vld [vmem:[%s610_s21 + $0x50] ss:$8 sps:$4 sm:$0xff]  }
  0x15   : > { %v533_v16 = vld [vmem:[%s610_s21 + $0x64] ss:$8 sps:$4 sm:$0xff]   ;;  %v535_v17 = vld [vmem:[%s610_s21 + $0x60] ss:$8 sps:$4 sm:$0xff]   ;;  %v536_v18 = vld [vmem:[%s610_s21 + $0x74] ss:$8 sps:$4 sm:$0xff]  }
  0x16   : > { %v538_v19 = vld [vmem:[%s610_s21 + $0x70] ss:$8 sps:$4 sm:$0xff]   ;;  %v539_v20 = vld [vmem:[%s610_s21 + $0x84] ss:$8 sps:$4 sm:$0xff]   ;;  %v541_v21 = vld [vmem:[%s610_s21 + $0x80] ss:$8 sps:$4 sm:$0xff]  }
  0x17   : > { %349 = vmatpush1.bf16.msra.mxu0 %v520_v7  ;;  %v542_v22 = vld [vmem:[%s610_s21 + $0x94] ss:$8 sps:$4 sm:$0xff]   ;;  %v544_v23 = vld [vmem:[%s610_s21 + $0x90] ss:$8 sps:$4 sm:$0xff]   ;;  %v545_v24 = vld [vmem:[%s610_s21 + $0xa4] ss:$8 sps:$4 sm:$0xff]  }
  0x18   : > { %350 = vmatprep.subr.bf16.mxu0 %v521_v8  ;;  %v547_v25 = vld [vmem:[%s610_s21 + $0xa0] ss:$8 sps:$4 sm:$0xff]   ;;  %v548_v26 = vld [vmem:[%s610_s21 + $0xb4] ss:$8 sps:$4 sm:$0xff]   ;;  %v550_v28 = vld [vmem:[%s610_s21 + $0xb0] ss:$8 sps:$4 sm:$0xff]  }
  0x19   : > { %v197_v27 = vld [vmem:[%s610_s21 + $0xc0] sm:$0x33] }
  0x1a   : > { %v498_v29 = vcombine.high %v197_v27, %v197_v27  ;;  %v497_v30 = vcombine.low %v197_v27, %v197_v27 }
  0x1b   : > { %351 = vmatpush1.bf16.msra.mxu0 %v523_v9 }
  0x1c   : > { %352 = vmatprep.subr.bf16.mxu0 %v524_v10  ;;  %v341_v31 = vsel %vm339_vm1, %v497_v30, 0 }
  0x1f   : > { %353 = vmatpush1.bf16.msra.mxu0 %v526_v11 }
  0x20   : > { %354 = vmatprep.subr.bf16.mxu0 %v527_v12 }
  0x23   : > { %355 = vmatpush1.bf16.msra.mxu0 %v529_v13 }
  0x24   : > { %356 = vmatprep.subr.bf16.mxu0 %v530_v14 }
  0x27   : > { %357 = vmatpush1.bf16.msra.mxu0 %v532_v15 }
  0x28   : > { %358 = vmatprep.subr.bf16.mxu0 %v533_v16 }
  0x2b   : > { %359 = vmatpush1.bf16.msra.mxu0 %v535_v17 }
  0x2c   : > { %360 = vmatprep.subr.bf16.mxu0 %v536_v18 }
  0x2f   : > { %361 = vmatpush1.bf16.msra.mxu0 %v538_v19 }
  0x30   : > { %362 = vmatprep.subr.bf16.mxu0 %v539_v20 }
  0x33   : > { %363 = vmatpush1.bf16.msra.mxu0 %v541_v21 }
  0x34   : > { %364 = vmatprep.subr.bf16.mxu0 %v542_v22 }
  0x37   : > { %365 = vmatpush1.bf16.msra.mxu0 %v544_v23 }
  0x38   : > { %366 = vmatprep.subr.bf16.mxu0 %v545_v24 }
  0x3b   : > { %367 = vmatpush1.bf16.msra.mxu0 %v547_v25 }
  0x3c   : > { %368 = vmatprep.subr.bf16.mxu0 %v548_v26 }
  0x3f   : > { %369 = vmatpush1.bf16.msra.mxu0 %v550_v28 }
  0x40   : > { %499 = vmatprep.subr.msk.bf16.mxu0 %vm339_vm1, %v498_v29 }
  0x43   : > { %371 = vmatpush1.bf16.msra.mxu0 %v341_v31 }
  0x46   : > { %379 = vmatmul.mubr.bf16.vlgmr.msra.gmra.mrb[0].mxu0 %v471_v32 }
  0x86   : > { %v202_v33 = vpop.permute.xlu0 %201 }
 0x119   : > { %v380_v34 = vpop.f32.mrb[0].mxu0 }
 0x11a   : > { %v381_v35 = vadd.f32 %v380_v34, %v202_v33  ;;  %v382_v36 = vpop.f32.mrb[1].mxu0 }
 0x11b   : > { %v383_v37 = vadd.f32 %v382_v36, %v202_v33  ;;  %v384_v38 = vpop.f32.mrb[2].mxu0 }
 0x11c   : > { %v385_v39 = vpop.f32.mrb[3].mxu0 }
 0x11d   : > { %v387_v40 = vadd.f32 %v383_v37, %v381_v35 }
 0x11f   : > { %388 = vadd.xlane.f32.xlu0 %v387_v40 }
 0x1ac   : > { %v389_v41 = vpop.xlane.xlu0 %388 }
 0x1ad   : > { %v391_v42 = vmul.f32 0.00390625, %v389_v41 }
 0x1af   : > { %v392_v43 = vsub.f32 %v381_v35, %v391_v42  ;;  %v393_v44 = vsub.f32 %v383_v37, %v391_v42 }
 0x1b1   : > { %v394_v45 = vmul.f32 %v392_v43, %v392_v43  ;;  %v395_v46 = vmul.f32 %v393_v44, %v393_v44 }
 0x1b3   : > { %v396_v47 = vadd.f32 %v395_v46, %v394_v45 }
 0x1b5   : > { %397 = vadd.xlane.f32.xlu1 %v396_v47 }
 0x242   : > { %v398_v48 = vpop.xlane.xlu1 %397 }
 0x243   : > { %v399_v49 = vmul.f32 0.00390625, %v398_v48 }
 0x245   : > { %v400_v50 = vadd.f32 1e-05, %v399_v49 }
 0x247   : > { %555 = vrsqrt.f32 %v400_v50 }
 0x251   : > { %v556_v51 = vpop.eup %555 }
 0x252   : > { %v402_v52 = vmul.f32 %v556_v51, %v392_v43  ;;  %v403_v53 = vmul.f32 %v556_v51, %v393_v44 }
 0x254   : > { %v404_v54 = vmax.f32 %v402_v52, 0.0  ;;  %v405_v55 = vmax.f32 %v403_v53, 0.0 }
 0x256   : > { %406 = vst [vmem:[%s170_s25] sm:$0xff] %v404_v54  ;;  %407 = vst [vmem:[%s170_s25 + $0x8] sm:$0xff] %v405_v55 }
 0x257 PF: > { %s13_s12 = sadd.s32 1, %s563_s12  }
 0x258   : > { %p10_p4 = scmp.ge.s32.totalorder %s13_s12, 4  }
 0x25a   :  { %12 = sbr.rel (!%p10_p4) target bundleno = 1 (0x1), region = 62 }

// kernel: ec_generator_forward.9
= control target key start
LH: loop header
LB: loop body
LE: loop exit
PB: predicated region body
PF: predicated region fallthrough
CT: control target
= control target key end

     0   :  { %s491_s12 = smov 0   ;;  %s527_s0 = inlined_call_operand.vmem [shape: bf16[16,128], index: 0, kind: input, shape index: {}]   ;;  %s528_s1 = inlined_call_operand.vmem [shape: f32[16,1], index: 1, kind: input, shape index: {}]   ;;  %s529_s2 = inlined_call_operand.vmem [shape: bf16[2,128,64], index: 2, kind: input, shape index: {}]   ;;  %s530_s3 = inlined_call_operand.vmem [shape: f32[2,16,64], index: 3, kind: output, shape index: {}]  }
   0x1 LB: > { %s384_s13 = sadd.s32 4294967295, %s466_s12   ;;  %p388_p0 = scmp.ge.s32.totalorder %s466_s12, 1  ;;  %s466_s12 = sphi %s491_s12, %s13_s12  }
   0x2   : > { %p137_p1 = scmp.lt.s32.totalorder %s466_s12, 3 }
   0x4   : > { %p138_p2 = pnand %p388_p0, %p137_p1 }
   0x5   : > { %p161_p3 = scmp.lt.s32.totalorder (!%p138_p2), %s384_s13, 1  ;;  %v468_v0 = vmov (!%p138_p2), 0.0   ;;  %vm469_vm0 = vmmov (!%p138_p2), 0   ;;  %v190_v1 = vld [vmem:[%s528_s1] sm:$0xff] (!%p138_p2)  ;;  %v470_v2 = vmov (!%p138_p2), 0   ;;  %v191_v3 = vld [vmem:[%s528_s1 + $0x8] sm:$0xff] (!%p138_p2) }
   0x6   : > { %141 = sbr.rel (%p138_p2) target bundleno = 578 (0x242), region = 32  ;;  %415 = vmatprep.subr.bf16.mxu0 (!%p138_p2), %v468_v0  ;;  %431 = vmatprep.mubr.msk.bf16.mxu0 (!%p138_p2), %vm469_vm0, %v468_v0  ;;  %v455_v12 = vld [vmem:[%s527_s0] sm:$0xff] (!%p138_p2)   ;;  %vm297_vm1 = vcmask (!%p138_p2), 523264  }
   0x7   : > { %446 = vset.pattern.permute.xlu0 (!%p138_p2), %v470_v2 }
   0x8   : > { %194 = vperm.xlu0 (!%p138_p2), %446, %v190_v1  }
   0xc   : > { %199 = vperm.xlu0 (!%p138_p2), %446, %v191_v3  }
   0xd   : > { %s532_s13 = smov (!%p161_p3, %s384_s13), 1 }
   0xe   : > { %s404_s16 = sshll.u32 %s532_s13, 6  ;;  %s405_s24 = sshll.u32 %s532_s13, 4 }
   0xf   : > { %s165_s21 = scalar_lea.vmem %s529_s2, %s404_s16  ;;  %s170_s27 = scalar_lea.vmem %s530_s3, %s405_s24 }
  0x10   : > { %v447_v4 = vld [vmem:[%s165_s21] sm:$0xff]   ;;  %v448_v5 = vld [vmem:[%s165_s21 + $0x8] sm:$0xff]   ;;  %v449_v6 = vld [vmem:[%s165_s21 + $0x10] sm:$0xff]  }
  0x11   : > { %416 = vmatpush3.bf16.msra.mxu0 %v447_v4  ;;  %v450_v7 = vld [vmem:[%s165_s21 + $0x18] sm:$0xff]   ;;  %v451_v8 = vld [vmem:[%s165_s21 + $0x20] sm:$0xff]   ;;  %v452_v9 = vld [vmem:[%s165_s21 + $0x28] sm:$0xff]  }
  0x12   : > { %417 = vmatprep.subr.bf16.mxu0 %v468_v0  ;;  %v453_v10 = vld [vmem:[%s165_s21 + $0x30] sm:$0xff]   ;;  %v454_v11 = vld [vmem:[%s165_s21 + $0x38] sm:$0xff]  }
  0x15   : > { %418 = vmatpush3.bf16.msra.mxu0 %v448_v5 }
  0x16   : > { %419 = vmatprep.subr.bf16.mxu0 %v468_v0 }
  0x19   : > { %420 = vmatpush3.bf16.msra.mxu0 %v449_v6 }
  0x1a   : > { %421 = vmatprep.subr.bf16.mxu0 %v468_v0 }
  0x1d   : > { %422 = vmatpush3.bf16.msra.mxu0 %v450_v7 }
  0x1e   : > { %423 = vmatprep.subr.bf16.mxu0 %v468_v0 }
  0x21   : > { %424 = vmatpush3.bf16.msra.mxu0 %v451_v8 }
  0x22   : > { %425 = vmatprep.subr.bf16.mxu0 %v468_v0 }
  0x25   : > { %426 = vmatpush3.bf16.msra.mxu0 %v452_v9 }
  0x26   : > { %427 = vmatprep.subr.bf16.mxu0 %v468_v0 }
  0x29   : > { %428 = vmatpush3.bf16.msra.mxu0 %v453_v10 }
  0x2a   : > { %429 = vmatprep.subr.bf16.mxu0 %v468_v0 }
  0x2d   : > { %430 = vmatpush3.bf16.msra.mxu0 %v454_v11 }
  0x30   : > { %432 = vmatmul.mubr.bf16.vlgmr.msra.gmra.mrb[0].mxu0 %v455_v12 }
  0x87   : > { %v195_v13 = vpop.permute.xlu0 %194 }
  0x8b   : > { %v200_v17 = vpop.permute.xlu0 %199 }
 0x103   : > { %v290_v14 = vpop.f32.mrb[0].mxu0 }
 0x104   : > { %v291_v15 = vadd.f32 %v290_v14, %v195_v13  ;;  %v433_v16 = vpop.f32.mrb[1].mxu0 }
 0x105   : > { %v293_v18 = vpop.f32.mrb[2].mxu0 }
 0x106   : > { %v294_v19 = vadd.f32 %v293_v18, %v200_v17  ;;  %v434_v20 = vpop.f32.mrb[3].mxu0  ;;  %v298_v21 = vsel %vm297_vm1, %v291_v15, 0.0 }
 0x107   : > { %299 = vadd.xlane.f32.xlu1 %v298_v21 }
 0x108   : > { %v301_v22 = vsel %vm297_vm1, %v294_v19, 0.0 }
 0x10b   : > { %302 = vadd.xlane.f32.xlu1 %v301_v22 }
 0x194   : > { %v300_v23 = vpop.xlane.xlu1 %299 }
 0x195   : > { %v305_v24 = vmul.f32 0.015625, %v300_v23 }
 0x197   : > { %v307_v25 = vsub.f32 %v291_v15, %v305_v24 }
 0x198   : > { %v303_v26 = vpop.xlane.xlu1 %302 }
 0x199   : > { %v306_v27 = vmul.f32 0.015625, %v303_v26  ;;  %v309_v28 = vmul.f32 %v307_v25, %v307_v25 }
 0x19b   : > { %v308_v29 = vsub.f32 %v294_v19, %v306_v27  ;;  %v311_v30 = vsel %vm297_vm1, %v309_v28, 0.0 }
 0x19c   : > { %312 = vadd.xlane.f32.xlu0 %v311_v30 }
 0x19d   : > { %v310_v31 = vmul.f32 %v308_v29, %v308_v29 }
 0x19f   : > { %v314_v32 = vsel %vm297_vm1, %v310_v31, 0.0 }
 0x1a0   : > { %315 = vadd.xlane.f32.xlu1 %v314_v32 }
 0x229   : > { %v313_v33 = vpop.xlane.xlu0 %312 }
 0x22a   : > { %v317_v34 = vmul.f32 0.015625, %v313_v33 }
 0x22c   : > { %v319_v35 = vadd.f32 1e-05, %v317_v34 }
 0x22d   : > { %v316_v36 = vpop.xlane.xlu1 %315 }
 0x22e   : > { %456 = vrsqrt.f32 %v319_v35  ;;  %v318_v37 = vmul.f32 0.015625, %v316_v36 }
 0x230   : > { %v320_v38 = vadd.f32 1e-05, %v318_v37 }
 0x232   : > { %458 = vrsqrt.f32 %v320_v38 }
 0x238   : > { %v457_v39 = vpop.eup %456 }
 0x239   : > { %v323_v40 = vmul.f32 %v457_v39, %v307_v25 }
 0x23b   : > { %v325_v41 = vmax.f32 %v323_v40, 0.0 }
 0x23c   : > { %v459_v42 = vpop.eup %458 }
 0x23d   : > { %327 = vst.msk [vmem:[%s170_s27] sm:$0xff] %vm297_vm1, %v325_v41  ;;  %v324_v43 = vmul.f32 %v459_v42, %v308_v29 }
 0x23f   : > { %v326_v44 = vmax.f32 %v324_v43, 0.0 }
 0x241   : > { %328 = vst.msk [vmem:[%s170_s27 + $0x8] sm:$0xff] %vm297_vm1, %v326_v44 }
 0x242 PF: > { %s13_s12 = sadd.s32 1, %s466_s12  }
 0x243   : > { %p10_p4 = scmp.ge.s32.totalorder %s13_s12, 4  }
 0x245   :  { %12 = sbr.rel (!%p10_p4) target bundleno = 1 (0x1), region = 62 }

// kernel: ec_generator_forward.10
= control target key start
LH: loop header
LB: loop body
LE: loop exit
PB: predicated region body
PF: predicated region fallthrough
CT: control target
= control target key end

     0   :  { %s478_s12 = smov 0   ;;  %s517_s0 = inlined_call_operand.vmem [shape: bf16[16,144], index: 0, kind: input, shape index: {}]   ;;  %s518_s1 = inlined_call_operand.vmem [shape: f32[16,1], index: 1, kind: input, shape index: {}]   ;;  %s519_s2 = inlined_call_operand.vmem [shape: bf16[2,144,64], index: 2, kind: input, shape index: {}]   ;;  %s520_s3 = inlined_call_operand.vmem [shape: f32[2,16,64], index: 3, kind: output, shape index: {}]  }
   0x1 LB: > { %s399_s13 = sadd.s32 4294967295, %s455_s12   ;;  %p403_p0 = scmp.ge.s32.totalorder %s455_s12, 1  ;;  %s455_s12 = sphi %s478_s12, %s13_s12  }
   0x2   : > { %p137_p1 = scmp.lt.s32.totalorder %s455_s12, 3 }
   0x4   : > { %p138_p2 = pnand %p403_p0, %p137_p1 }
   0x5   : > { %p161_p3 = scmp.lt.s32.totalorder (!%p138_p2), %s399_s13, 1  ;;  %v457_v0 = vmov (!%p138_p2), 0   ;;  %v444_v1 = vld [vmem:[%s517_s0 + $0x4] ss:$8 sps:$4 sm:$0xff] (!%p138_p2)   ;;  %vm267_vm0 = vcmask (!%p138_p2), 130048   ;;  %vm312_vm1 = vcmask (!%p138_p2), 523264  }
   0x6   : > { %141 = sbr.rel (%p138_p2) target bundleno = 583 (0x247), region = 32  ;;  %271 = vmatprep.subr.bf16.mxu0 (!%p138_p2), %v457_v0  ;;  %432 = vset.pattern.permute.xlu0 (!%p138_p2), %v457_v0  ;;  %v192_v2 = vld [vmem:[%s518_s1] sm:$0xff] (!%p138_p2)  ;;  %v193_v3 = vld [vmem:[%s518_s1 + $0x8] sm:$0xff] (!%p138_p2) }
   0x7   : > { %196 = vperm.xlu0 (!%p138_p2), %432, %v192_v2   ;;  %418 = vmatprep.mubr.msk.bf16.mxu0 (!%p138_p2), %vm267_vm0, %v444_v1  ;;  %v442_v13 = vld [vmem:[%s517_s0] ss:$8 sps:$4 sm:$0xff] (!%p138_p2)  }
   0xb   : > { %201 = vperm.xlu0 (!%p138_p2), %432, %v193_v3  }
   0xd   : > { %s522_s13 = smov (!%p161_p3, %s399_s13), 1 }
   0xe   : > { %s422_s20 = smul.u32 72, %s522_s13  ;;  %s421_s26 = sshll.u32 %s522_s13, 4 }
   0xf   : > { %s170_s29 = scalar_lea.vmem %s520_s3, %s421_s26 }
  0x10   : > { %s165_s23 = scalar_lea.vmem %s519_s2, %s422_s20 }
  0x11   : > { %v433_v4 = vld [vmem:[%s165_s23] sm:$0xff]   ;;  %v434_v5 = vld [vmem:[%s165_s23 + $0x8] sm:$0xff]   ;;  %v435_v6 = vld [vmem:[%s165_s23 + $0x10] sm:$0xff]  }
  0x12   : > { %272 = vmatpush1.bf16.msra.mxu0 %v433_v4  ;;  %v436_v7 = vld [vmem:[%s165_s23 + $0x18] sm:$0xff]   ;;  %v437_v8 = vld [vmem:[%s165_s23 + $0x20] sm:$0xff]   ;;  %v438_v9 = vld [vmem:[%s165_s23 + $0x28] sm:$0xff]  }
  0x13   : > { %273 = vmatprep.subr.bf16.mxu0 %v457_v0  ;;  %v439_v10 = vld [vmem:[%s165_s23 + $0x30] sm:$0xff]   ;;  %v440_v11 = vld [vmem:[%s165_s23 + $0x38] sm:$0xff]   ;;  %v441_v12 = vld [vmem:[%s165_s23 + $0x40] sm:$0xff]  }
  0x16   : > { %274 = vmatpush1.bf16.msra.mxu0 %v434_v5 }
  0x17   : > { %275 = vmatprep.subr.bf16.mxu0 %v457_v0 }
  0x1a   : > { %276 = vmatpush1.bf16.msra.mxu0 %v435_v6 }
  0x1b   : > { %277 = vmatprep.subr.bf16.mxu0 %v457_v0 }
  0x1e   : > { %278 = vmatpush1.bf16.msra.mxu0 %v436_v7 }
  0x1f   : > { %279 = vmatprep.subr.bf16.mxu0 %v457_v0 }
  0x22   : > { %280 = vmatpush1.bf16.msra.mxu0 %v437_v8 }
  0x23   : > { %281 = vmatprep.subr.bf16.mxu0 %v457_v0 }
  0x26   : > { %282 = vmatpush1.bf16.msra.mxu0 %v438_v9 }
  0x27   : > { %283 = vmatprep.subr.bf16.mxu0 %v457_v0 }
  0x2a   : > { %284 = vmatpush1.bf16.msra.mxu0 %v439_v10 }
  0x2b   : > { %285 = vmatprep.subr.bf16.mxu0 %v457_v0 }
  0x2e   : > { %286 = vmatpush1.bf16.msra.mxu0 %v440_v11 }
  0x2f   : > { %287 = vmatprep.subr.bf16.mxu0 %v457_v0 }
  0x32   : > { %288 = vmatpush1.bf16.msra.mxu0 %v441_v12 }
  0x35   : > { %304 = vmatmul.mubr.bf16.vlgmr.msra.gmra.mrb[0].mxu0 %v442_v13 }
  0x86   : > { %v197_v14 = vpop.permute.xlu0 %196 }
  0x8a   : > { %v202_v18 = vpop.permute.xlu0 %201 }
 0x108   : > { %v305_v15 = vpop.f32.mrb[0].mxu0 }
 0x109   : > { %v306_v16 = vadd.f32 %v305_v15, %v197_v14  ;;  %v307_v17 = vpop.f32.mrb[1].mxu0 }
 0x10a   : > { %v308_v19 = vpop.f32.mrb[2].mxu0 }
 0x10b   : > { %v309_v20 = vadd.f32 %v308_v19, %v202_v18  ;;  %v310_v21 = vpop.f32.mrb[3].mxu0  ;;  %v313_v22 = vsel %vm312_vm1, %v306_v16, 0.0 }
 0x10c   : > { %314 = vadd.xlane.f32.xlu1 %v313_v22 }
 0x10d   : > { %v316_v23 = vsel %vm312_vm1, %v309_v20, 0.0 }
 0x110   : > { %317 = vadd.xlane.f32.xlu1 %v316_v23 }
 0x199   : > { %v315_v24 = vpop.xlane.xlu1 %314 }
 0x19a   : > { %v320_v25 = vmul.f32 0.015625, %v315_v24 }
 0x19c   : > { %v322_v26 = vsub.f32 %v306_v16, %v320_v25 }
 0x19d   : > { %v318_v27 = vpop.xlane.xlu1 %317 }
 0x19e   : > { %v321_v28 = vmul.f32 0.015625, %v318_v27  ;;  %v324_v29 = vmul.f32 %v322_v26, %v322_v26 }
 0x1a0   : > { %v323_v30 = vsub.f32 %v309_v20, %v321_v28  ;;  %v326_v31 = vsel %vm312_vm1, %v324_v29, 0.0 }
 0x1a1   : > { %327 = vadd.xlane.f32.xlu0 %v326_v31 }
 0x1a2   : > { %v325_v32 = vmul.f32 %v323_v30, %v323_v30 }
 0x1a4   : > { %v329_v33 = vsel %vm312_vm1, %v325_v32, 0.0 }
 0x1a5   : > { %330 = vadd.xlane.f32.xlu1 %v329_v33 }
 0x22e   : > { %v328_v34 = vpop.xlane.xlu0 %327 }
 0x22f   : > { %v332_v35 = vmul.f32 0.015625, %v328_v34 }
 0x231   : > { %v334_v36 = vadd.f32 1e-05, %v332_v35 }
 0x232   : > { %v331_v37 = vpop.xlane.xlu1 %330 }
 0x233   : > { %445 = vrsqrt.f32 %v334_v36  ;;  %v333_v38 = vmul.f32 0.015625, %v331_v37 }
 0x235   : > { %v335_v39 = vadd.f32 1e-05, %v333_v38 }
 0x237   : > { %447 = vrsqrt.f32 %v335_v39 }
 0x23d   : > { %v446_v40 = vpop.eup %445 }
 0x23e   : > { %v338_v41 = vmul.f32 %v446_v40, %v322_v26 }
 0x240   : > { %v340_v42 = vmax.f32 %v338_v41, 0.0 }
 0x241   : > { %v448_v43 = vpop.eup %447 }
 0x242   : > { %342 = vst.msk [vmem:[%s170_s29] sm:$0xff] %vm312_vm1, %v340_v42  ;;  %v339_v44 = vmul.f32 %v448_v43, %v323_v30 }
 0x244   : > { %v341_v45 = vmax.f32 %v339_v44, 0.0 }
 0x246   : > { %343 = vst.msk [vmem:[%s170_s29 + $0x8] sm:$0xff] %vm312_vm1, %v341_v45 }
 0x247 PF: > { %s13_s12 = sadd.s32 1, %s455_s12  }
 0x248   : > { %p10_p4 = scmp.ge.s32.totalorder %s13_s12, 4  }
 0x24a   :  { %12 = sbr.rel (!%p10_p4) target bundleno = 1 (0x1), region = 62 }

// kernel: ec_generator_forward.11
= control target key start
LH: loop header
LB: loop body
LE: loop exit
PB: predicated region body
PF: predicated region fallthrough
CT: control target
= control target key end

     0   :  { %s547_s15 = smov 0   ;;  %s589_s0 = inlined_call_operand.vmem [shape: bf16[16,144], index: 0, kind: input, shape index: {}]   ;;  %s590_s1 = inlined_call_operand.vmem [shape: f32[16,1], index: 1, kind: input, shape index: {}]   ;;  %s591_s2 = inlined_call_operand.vmem [shape: bf16[2,144,64], index: 2, kind: input, shape index: {}]   ;;  %s592_s3 = inlined_call_operand.vmem [shape: f32[2,16,64], index: 3, kind: input, shape index: {}]   ;;  %s593_s4 = inlined_call_operand.vmem [shape: f32[2,16,64], index: 4, kind: output, shape index: {}]  }
   0x1 LB: > { %s460_s16 = sadd.s32 4294967295, %s519_s15   ;;  %p464_p0 = scmp.ge.s32.totalorder %s519_s15, 1  ;;  %s519_s15 = sphi %s547_s15, %s14_s15  }
   0x2   : > { %p172_p1 = scmp.lt.s32.totalorder %s519_s15, 3 }
   0x4   : > { %p173_p2 = pnand %p464_p0, %p172_p1 }
   0x5   : > { %p203_p3 = scmp.lt.s32.totalorder (!%p173_p2), %s460_s16, 1  ;;  %v521_v0 = vmov (!%p173_p2), 0   ;;  %v508_v1 = vld [vmem:[%s589_s0 + $0x4] ss:$8 sps:$4 sm:$0xff] (!%p173_p2)   ;;  %vm314_vm0 = vcmask (!%p173_p2), 130048   ;;  %vm359_vm1 = vcmask (!%p173_p2), 523264  }
   0x6   : > { %176 = sbr.rel (%p173_p2) target bundleno = 583 (0x247), region = 36  ;;  %318 = vmatprep.subr.bf16.mxu0 (!%p173_p2), %v521_v0  ;;  %496 = vset.pattern.permute.xlu0 (!%p173_p2), %v521_v0  ;;  %v239_v2 = vld [vmem:[%s590_s1] sm:$0xff] (!%p173_p2)  ;;  %v240_v3 = vld [vmem:[%s590_s1 + $0x8] sm:$0xff] (!%p173_p2) }
   0x7   : > { %243 = vperm.xlu0 (!%p173_p2), %496, %v239_v2   ;;  %481 = vmatprep.mubr.msk.bf16.mxu0 (!%p173_p2), %vm314_vm0, %v508_v1  ;;  %v506_v13 = vld [vmem:[%s589_s0] ss:$8 sps:$4 sm:$0xff] (!%p173_p2)  }
   0xb   : > { %248 = vperm.xlu0 (!%p173_p2), %496, %v240_v3  }
   0xd   : > { %s595_s16 = smov (!%p203_p3, %s460_s16), 1 }
   0xe   : > { %s486_s23 = smul.u32 72, %s595_s16  ;;  %s484_s29 = sshll.u32 %s595_s16, 4 }
   0xf   : > { %s212_s6 = scalar_lea.vmem %s592_s3, %s484_s29  ;;  %s217_s9 = scalar_lea.vmem %s593_s4, %s484_s29 }
  0x10   : > { %s207_s26 = scalar_lea.vmem %s591_s2, %s486_s23  ;;  %v387_v41 = vld [vmem:[%s212_s6] sm:$0xff]  ;;  %v388_v45 = vld [vmem:[%s212_s6 + $0x8] sm:$0xff] }
  0x11   : > { %v497_v4 = vld [vmem:[%s207_s26] sm:$0xff]   ;;  %v498_v5 = vld [vmem:[%s207_s26 + $0x8] sm:$0xff]   ;;  %v499_v6 = vld [vmem:[%s207_s26 + $0x10] sm:$0xff]  }
  0x12   : > { %319 = vmatpush1.bf16.msra.mxu0 %v497_v4  ;;  %v500_v7 = vld [vmem:[%s207_s26 + $0x18] sm:$0xff]   ;;  %v501_v8 = vld [vmem:[%s207_s26 + $0x20] sm:$0xff]   ;;  %v502_v9 = vld [vmem:[%s207_s26 + $0x28] sm:$0xff]  }
  0x13   : > { %320 = vmatprep.subr.bf16.mxu0 %v521_v0  ;;  %v503_v10 = vld [vmem:[%s207_s26 + $0x30] sm:$0xff]   ;;  %v504_v11 = vld [vmem:[%s207_s26 + $0x38] sm:$0xff]   ;;  %v505_v12 = vld [vmem:[%s207_s26 + $0x40] sm:$0xff]  }
  0x16   : > { %321 = vmatpush1.bf16.msra.mxu0 %v498_v5 }
  0x17   : > { %322 = vmatprep.subr.bf16.mxu0 %v521_v0 }
  0x1a   : > { %323 = vmatpush1.bf16.msra.mxu0 %v499_v6 }
  0x1b   : > { %324 = vmatprep.subr.bf16.mxu0 %v521_v0 }
  0x1e   : > { %325 = vmatpush1.bf16.msra.mxu0 %v500_v7 }
  0x1f   : > { %326 = vmatprep.subr.bf16.mxu0 %v521_v0 }
  0x22   : > { %327 = vmatpush1.bf16.msra.mxu0 %v501_v8 }
  0x23   : > { %328 = vmatprep.subr.bf16.mxu0 %v521_v0 }
  0x26   : > { %329 = vmatpush1.bf16.msra.mxu0 %v502_v9 }
  0x27   : > { %330 = vmatprep.subr.bf16.mxu0 %v521_v0 }
  0x2a   : > { %331 = vmatpush1.bf16.msra.mxu0 %v503_v10 }
  0x2b   : > { %332 = vmatprep.subr.bf16.mxu0 %v521_v0 }
  0x2e   : > { %333 = vmatpush1.bf16.msra.mxu0 %v504_v11 }
  0x2f   : > { %334 = vmatprep.subr.bf16.mxu0 %v521_v0 }
  0x32   : > { %335 = vmatpush1.bf16.msra.mxu0 %v505_v12 }
  0x35   : > { %351 = vmatmul.mubr.bf16.vlgmr.msra.gmra.mrb[0].mxu0 %v506_v13 }
  0x86   : > { %v244_v14 = vpop.permute.xlu0 %243 }
  0x8a   : > { %v249_v18 = vpop.permute.xlu0 %248 }
 0x108   : > { %v352_v15 = vpop.f32.mrb[0].mxu0 }
 0x109   : > { %v353_v16 = vadd.f32 %v352_v15, %v244_v14  ;;  %v354_v17 = vpop.f32.mrb[1].mxu0 }
 0x10a   : > { %v355_v19 = vpop.f32.mrb[2].mxu0 }
 0x10b   : > { %v356_v20 = vadd.f32 %v355_v19, %v249_v18  ;;  %v357_v21 = vpop.f32.mrb[3].mxu0  ;;  %v360_v22 = vsel %vm359_vm1, %v353_v16, 0.0 }
 0x10c   : > { %361 = vadd.xlane.f32.xlu1 %v360_v22 }
 0x10d   : > { %v363_v23 = vsel %vm359_vm1, %v356_v20, 0.0 }
 0x110   : > { %364 = vadd.xlane.f32.xlu1 %v363_v23 }
 0x199   : > { %v362_v24 = vpop.xlane.xlu1 %361 }
 0x19a   : > { %v367_v25 = vmul.f32 0.015625, %v362_v24 }
 0x19c   : > { %v369_v26 = vsub.f32 %v353_v16, %v367_v25 }
 0x19d   : > { %v365_v27 = vpop.xlane.xlu1 %364 }
 0x19e   : > { %v368_v28 = vmul.f32 0.015625, %v365_v27  ;;  %v371_v29 = vmul.f32 %v369_v26, %v369_v26 }
 0x1a0   : > { %v370_v30 = vsub.f32 %v356_v20, %v368_v28  ;;  %v373_v31 = vsel %vm359_vm1, %v371_v29, 0.0 }
 0x1a1   : > { %374 = vadd.xlane.f32.xlu0 %v373_v31 }
 0x1a2   : > { %v372_v32 = vmul.f32 %v370_v30, %v370_v30 }
 0x1a4   : > { %v376_v33 = vsel %vm359_vm1, %v372_v32, 0.0 }
 0x1a5   : > { %377 = vadd.xlane.f32.xlu1 %v376_v33 }
 0x22e   : > { %v375_v34 = vpop.xlane.xlu0 %374 }
 0x22f   : > { %v379_v35 = vmul.f32 0.015625, %v375_v34 }
 0x231   : > { %v381_v36 = vadd.f32 1e-05, %v379_v35 }
 0x232   : > { %v378_v37 = vpop.xlane.xlu1 %377 }
 0x233   : > { %509 = vrsqrt.f32 %v381_v36  ;;  %v380_v38 = vmul.f32 0.015625, %v378_v37 }
 0x235   : > { %v382_v39 = vadd.f32 1e-05, %v380_v38 }
 0x237   : > { %511 = vrsqrt.f32 %v382_v39 }
 0x23d   : > { %v510_v40 = vpop.eup %509 }
 0x23e   : > { %v385_v42 = vmul.f32 %v510_v40, %v369_v26 }
 0x240   : > { %v389_v43 = vadd.f32 %v387_v41, %v385_v42 }
 0x241   : > { %v512_v44 = vpop.eup %511 }
 0x242   : > { %391 = vst.msk [vmem:[%s217_s9] sm:$0xff] %vm359_vm1, %v389_v43  ;;  %v386_v46 = vmul.f32 %v512_v44, %v370_v30 }
 0x244   : > { %v390_v47 = vadd.f32 %v388_v45, %v386_v46 }
 0x246   : > { %392 = vst.msk [vmem:[%s217_s9 + $0x8] sm:$0xff] %vm359_vm1, %v390_v47 }
 0x247 PF: > { %s14_s15 = sadd.s32 1, %s519_s15  }
 0x248   : > { %p11_p4 = scmp.ge.s32.totalorder %s14_s15, 4  }
 0x24a   :  { %13 = sbr.rel (!%p11_p4) target bundleno = 1 (0x1), region = 69 }

// kernel: ec_generator_forward.14
= control target key start
LH: loop header
LB: loop body
LE: loop exit
PB: predicated region body
PF: predicated region fallthrough
CT: control target
= control target key end

     0   :  { %s632_s12 = smov 0   ;;  %s699_s0 = inlined_call_operand.vmem [shape: bf16[8,256], index: 0, kind: input, shape index: {}]   ;;  %s700_s1 = inlined_call_operand.vmem [shape: f32[8,1], index: 1, kind: input, shape index: {}]   ;;  %s701_s2 = inlined_call_operand.vmem [shape: bf16[2,256,256], index: 2, kind: input, shape index: {}]   ;;  %s702_s3 = inlined_call_operand.vmem [shape: f32[2,8,256], index: 3, kind: output, shape index: {}]  }
   0x1 LB: > { %s494_s13 = sadd.s32 4294967295, %s609_s12   ;;  %p498_p0 = scmp.ge.s32.totalorder %s609_s12, 1  ;;  %s609_s12 = sphi %s632_s12, %s13_s12  }
   0x2   : > { %p137_p1 = scmp.lt.s32.totalorder %s609_s12, 3 }
   0x4   : > { %p138_p2 = pnand %p498_p0, %p137_p1 }
   0x5   : > { %p161_p3 = scmp.lt.s32.totalorder (!%p138_p2), %s494_s13, 1  ;;  %v643_v0 = vld [vmem:[%s699_s0] sm:$0xff] (!%p138_p2)  ;;  %v611_v3 = vmov (!%p138_p2), 0  }
   0x6   : > { %141 = sbr.rel (%p138_p2) target bundleno = 610 (0x262), region = 32  ;;  %v204_v1 = vld [vmem:[%s700_s1] sm:$0xff] (!%p138_p2)  ;;  %v504_v2 = vcombine.high (!%p138_p2), %v643_v0, %v643_v0  ;;  %550 = vset.pattern.permute.xlu0 (!%p138_p2), %v611_v3  ;;  %v503_v36 = vcombine.low (!%p138_p2), %v643_v0, %v643_v0 }
   0x7   : > { %207 = vperm.xlu0 (!%p138_p2), %550, %v204_v1  }
   0x8   : > { %409 = vmatprep.mubr.bf16.mxu0 (!%p138_p2), %v504_v2 }
   0xd   : > { %s704_s13 = smov (!%p161_p3, %s494_s13), 1 }
   0xe   : > { %s539_s18 = sshll.u32 %s704_s13, 8  ;;  %s540_s22 = sshll.u32 %s704_s13, 4 }
   0xf   : > { %s656_s21 = scalar_lea.vmem %s701_s2, %s539_s18  ;;  %s170_s25 = scalar_lea.vmem %s702_s3, %s540_s22 }
  0x10   : > { %v551_v4 = vld [vmem:[%s656_s21 + $0x4] ss:$8 sps:$4 sm:$0xff]   ;;  %v553_v5 = vld [vmem:[%s656_s21] ss:$8 sps:$4 sm:$0xff]   ;;  %v554_v6 = vld [vmem:[%s656_s21 + $0x14] ss:$8 sps:$4 sm:$0xff]  }
  0x11   : > { %377 = vmatprep.subr.bf16.mxu0 %v551_v4  ;;  %v556_v7 = vld [vmem:[%s656_s21 + $0x10] ss:$8 sps:$4 sm:$0xff]   ;;  %v557_v8 = vld [vmem:[%s656_s21 + $0x24] ss:$8 sps:$4 sm:$0xff]   ;;  %v559_v9 = vld [vmem:[%s656_s21 + $0x20] ss:$8 sps:$4 sm:$0xff]  }
  0x12   : > { %378 = vmatpush1.bf16.msra.mxu0 %v553_v5  ;;  %v560_v10 = vld [vmem:[%s656_s21 + $0x34] ss:$8 sps:$4 sm:$0xff]   ;;  %v562_v11 = vld [vmem:[%s656_s21 + $0x30] ss:$8 sps:$4 sm:$0xff]   ;;  %v563_v12 = vld [vmem:[%s656_s21 + $0x44] ss:$8 sps:$4 sm:$0xff]  }
  0x13   : > { %379 = vmatprep.subr.bf16.mxu0 %v554_v6  ;;  %v565_v13 = vld [vmem:[%s656_s21 + $0x40] ss:$8 sps:$4 sm:$0xff]   ;;  %v566_v14 = vld [vmem:[%s656_s21 + $0x54] ss:$8 sps:$4 sm:$0xff]   ;;  %v568_v15 = vld [vmem:[%s656_s21 + $0x50] ss:$8 sps:$4 sm:$0xff]  }
  0x14   : > { %v569_v16 = vld [vmem:[%s656_s21 + $0x64] ss:$8 sps:$4 sm:$0xff]   ;;  %v571_v17 = vld [vmem:[%s656_s21 + $0x60] ss:$8 sps:$4 sm:$0xff]   ;;  %v572_v18 = vld [vmem:[%s656_s21 + $0x74] ss:$8 sps:$4 sm:$0xff]  }
  0x15   : > { %v574_v19 = vld [vmem:[%s656_s21 + $0x70] ss:$8 sps:$4 sm:$0xff]   ;;  %v575_v20 = vld [vmem:[%s656_s21 + $0x84] ss:$8 sps:$4 sm:$0xff]   ;;  %v577_v21 = vld [vmem:[%s656_s21 + $0x80] ss:$8 sps:$4 sm:$0xff]  }
  0x16   : > { %380 = vmatpush1.bf16.msra.mxu0 %v556_v7  ;;  %v578_v22 = vld [vmem:[%s656_s21 + $0x94] ss:$8 sps:$4 sm:$0xff]   ;;  %v580_v23 = vld [vmem:[%s656_s21 + $0x90] ss:$8 sps:$4 sm:$0xff]   ;;  %v581_v24 = vld [vmem:[%s656_s21 + $0xa4] ss:$8 sps:$4 sm:$0xff]  }
  0x17   : > { %381 = vmatprep.subr.bf16.mxu0 %v557_v8  ;;  %v583_v25 = vld [vmem:[%s656_s21 + $0xa0] ss:$8 sps:$4 sm:$0xff]   ;;  %v584_v26 = vld [vmem:[%s656_s21 + $0xb4] ss:$8 sps:$4 sm:$0xff]   ;;  %v586_v27 = vld [vmem:[%s656_s21 + $0xb0] ss:$8 sps:$4 sm:$0xff]  }
  0x18   : > { %v587_v28 = vld [vmem:[%s656_s21 + $0xc4] ss:$8 sps:$4 sm:$0xff]   ;;  %v589_v29 = vld [vmem:[%s656_s21 + $0xc0] ss:$8 sps:$4 sm:$0xff]   ;;  %v590_v30 = vld [vmem:[%s656_s21 + $0xd4] ss:$8 sps:$4 sm:$0xff]  }
  0x19   : > { %v592_v31 = vld [vmem:[%s656_s21 + $0xd0] ss:$8 sps:$4 sm:$0xff]   ;;  %v593_v32 = vld [vmem:[%s656_s21 + $0xe4] ss:$8 sps:$4 sm:$0xff]   ;;  %v595_v33 = vld [vmem:[%s656_s21 + $0xe0] ss:$8 sps:$4 sm:$0xff]  }
  0x1a   : > { %382 = vmatpush1.bf16.msra.mxu0 %v559_v9  ;;  %v596_v34 = vld [vmem:[%s656_s21 + $0xf4] ss:$8 sps:$4 sm:$0xff]   ;;  %v598_v35 = vld [vmem:[%s656_s21 + $0xf0] ss:$8 sps:$4 sm:$0xff]  }
  0x1b   : > { %383 = vmatprep.subr.bf16.mxu0 %v560_v10 }
  0x1e   : > { %384 = vmatpush1.bf16.msra.mxu0 %v562_v11 }
  0x1f   : > { %385 = vmatprep.subr.bf16.mxu0 %v563_v12 }
  0x22   : > { %386 = vmatpush1.bf16.msra.mxu0 %v565_v13 }
  0x23   : > { %387 = vmatprep.subr.bf16.mxu0 %v566_v14 }
  0x26   : > { %388 = vmatpush1.bf16.msra.mxu0 %v568_v15 }
  0x27   : > { %389 = vmatprep.subr.bf16.mxu0 %v569_v16 }
  0x2a   : > { %390 = vmatpush1.bf16.msra.mxu0 %v571_v17 }
  0x2b   : > { %391 = vmatprep.subr.bf16.mxu0 %v572_v18 }
  0x2e   : > { %392 = vmatpush1.bf16.msra.mxu0 %v574_v19 }
  0x2f   : > { %393 = vmatprep.subr.bf16.mxu0 %v575_v20 }
  0x32   : > { %394 = vmatpush1.bf16.msra.mxu0 %v577_v21 }
  0x33   : > { %395 = vmatprep.subr.bf16.mxu0 %v578_v22 }
  0x36   : > { %396 = vmatpush1.bf16.msra.mxu0 %v580_v23 }
  0x37   : > { %397 = vmatprep.subr.bf16.mxu0 %v581_v24 }
  0x3a   : > { %398 = vmatpush1.bf16.msra.mxu0 %v583_v25 }
  0x3b   : > { %399 = vmatprep.subr.bf16.mxu0 %v584_v26 }
  0x3e   : > { %400 = vmatpush1.bf16.msra.mxu0 %v586_v27 }
  0x3f   : > { %401 = vmatprep.subr.bf16.mxu0 %v587_v28 }
  0x42   : > { %402 = vmatpush1.bf16.msra.mxu0 %v589_v29 }
  0x43   : > { %403 = vmatprep.subr.bf16.mxu0 %v590_v30 }
  0x46   : > { %404 = vmatpush1.bf16.msra.mxu0 %v592_v31 }
  0x47   : > { %405 = vmatprep.subr.bf16.mxu0 %v593_v32 }
  0x4a   : > { %406 = vmatpush1.bf16.msra.mxu0 %v595_v33 }
  0x4b   : > { %407 = vmatprep.subr.bf16.mxu0 %v596_v34 }
  0x4e   : > { %408 = vmatpush1.bf16.msra.mxu0 %v598_v35 }
  0x51   : > { %410 = vmatmul.mubr.bf16.vlgmr.msra.gmra.mrb[0].mxu0 %v503_v36 }
  0x86   : > { %v208_v37 = vpop.permute.xlu0 %207 }
 0x124   : > { %v411_v38 = vpop.f32.mrb[0].mxu0 }
 0x125   : > { %v412_v39 = vadd.f32 %v411_v38, %v208_v37  ;;  %v413_v40 = vpop.f32.mrb[1].mxu0 }
 0x126   : > { %v414_v41 = vadd.f32 %v413_v40, %v208_v37  ;;  %v415_v42 = vpop.f32.mrb[2].mxu0 }
 0x127   : > { %v416_v43 = vpop.f32.mrb[3].mxu0 }
 0x128   : > { %v418_v44 = vadd.f32 %v414_v41, %v412_v39 }
 0x12a   : > { %419 = vadd.xlane.f32.xlu0 %v418_v44 }
 0x1b7   : > { %v420_v45 = vpop.xlane.xlu0 %419 }
 0x1b8   : > { %v422_v46 = vmul.f32 0.00390625, %v420_v45 }
 0x1ba   : > { %v423_v47 = vsub.f32 %v412_v39, %v422_v46  ;;  %v424_v48 = vsub.f32 %v414_v41, %v422_v46 }
 0x1bc   : > { %v425_v49 = vmul.f32 %v423_v47, %v423_v47  ;;  %v426_v50 = vmul.f32 %v424_v48, %v424_v48 }
 0x1be   : > { %v427_v51 = vadd.f32 %v426_v50, %v425_v49 }
 0x1c0   : > { %428 = vadd.xlane.f32.xlu1 %v427_v51 }
 0x24d   : > { %v429_v52 = vpop.xlane.xlu1 %428 }
 0x24e   : > { %v430_v53 = vmul.f32 0.00390625, %v429_v52 }
 0x250   : > { %v431_v54 = vadd.f32 1e-05, %v430_v53 }
 0x252   : > { %601 = vrsqrt.f32 %v431_v54 }
 0x25c   : > { %v602_v55 = vpop.eup %601 }
 0x25d   : > { %v433_v56 = vmul.f32 %v602_v55, %v423_v47  ;;  %v434_v57 = vmul.f32 %v602_v55, %v424_v48 }
 0x25f   : > { %v435_v58 = vmax.f32 %v433_v56, 0.0  ;;  %v436_v59 = vmax.f32 %v434_v57, 0.0 }
 0x261   : > { %437 = vst [vmem:[%s170_s25] sm:$0xff] %v435_v58  ;;  %438 = vst [vmem:[%s170_s25 + $0x8] sm:$0xff] %v436_v59 }
 0x262 PF: > { %s13_s12 = sadd.s32 1, %s609_s12  }
 0x263   : > { %p10_p4 = scmp.ge.s32.totalorder %s13_s12, 4  }
 0x265   :  { %12 = sbr.rel (!%p10_p4) target bundleno = 1 (0x1), region = 62 }

// kernel: ec_generator_forward.15
= control target key start
LH: loop header
LB: loop body
LE: loop exit
PB: predicated region body
PF: predicated region fallthrough
CT: control target
= control target key end

     0   :  { %s837_s12 = smov 0   ;;  %s925_s0 = inlined_call_operand.vmem [shape: bf16[3,392], index: 0, kind: input, shape index: {}]   ;;  %s926_s1 = inlined_call_operand.vmem [shape: f32[3,1], index: 1, kind: input, shape index: {}]   ;;  %s927_s2 = inlined_call_operand.vmem [shape: bf16[2,392,256], index: 2, kind: input, shape index: {}]   ;;  %s928_s3 = inlined_call_operand.vmem [shape: f32[2,3,256], index: 3, kind: output, shape index: {}]  }
   0x1 LB: > { %s649_s13 = sadd.s32 4294967295, %s813_s12   ;;  %p653_p0 = scmp.ge.s32.totalorder %s813_s12, 1  ;;  %s813_s12 = sphi %s837_s12, %s13_s12  }
   0x2   : > { %p137_p1 = scmp.lt.s32.totalorder %s813_s12, 3 }
   0x4   : > { %p138_p2 = pnand %p653_p0, %p137_p1 }
   0x5   : > { %p161_p3 = scmp.lt.s32.totalorder (!%p138_p2), %s649_s13, 1  ;;  %v172_v0 = vld [vmem:[%s925_s0] sm:$0xff] (!%p138_p2)  ;;  %v233_v1 = vlaneseq (!%p138_p2)  ;;  %v815_v2 = vmov (!%p138_p2), 1983009808   ;;  %v816_v6 = vmov (!%p138_p2), 0   ;;  %vm494_vm0 = vcmask (!%p138_p2), 64512  }
   0x6   : > { %141 = sbr.rel (%p138_p2) target bundleno = 313 (0x139), region = 32  ;;  %v231_v3 = vunpack.c.l.s4 (!%p138_p2), %v815_v2  ;;  %v222_v4 = vld [vmem:[%s926_s1] sm:$0x7] (!%p138_p2)  ;;  %727 = vset.pattern.permute.xlu0 (!%p138_p2), %v816_v6  ;;  %v229_v7 = vcombine.high (!%p138_p2), %v172_v0, %v172_v0  ;;  %vm498_vm1 = vcmask (!%p138_p2), 1043456  }
   0x7   : > { %v234_v5 = vshrl.u32 (!%p138_p2), %v233_v1, 7  ;;  %225 = vperm.xlu0 (!%p138_p2), %727, %v222_v4  }
   0x8   : > { %v232_v8 = vunpack.c.0.s8 (!%p138_p2), %v231_v3 }
   0xa   : > { %v235_v9 = vsub.s32 (!%p138_p2), %v232_v8, %v234_v5 }
   0xc   : > { %v860_v11 = vrot.slane (!%p138_p2), %v229_v7, %v235_v9  ;;  %v862_v12 = vrot.slane (!%p138_p2), %v172_v0, %v235_v9 }
   0xd   : > { %s930_s13 = smov (!%p161_p3, %s649_s13), 1 }
   0xe   : > { %s716_s18 = smul.u32 392, %s930_s13  ;;  %v245_v15 = vcombine.high %v860_v11, %v860_v11  ;;  %v244_v16 = vcombine.high %v862_v12, %v862_v12  ;;  %s711_s22 = sshll.u32 %s930_s13, 3 }
   0xf   : > { %s170_s25 = scalar_lea.vmem %s928_s3, %s711_s22 }
  0x10   : > { %s857_s21 = scalar_lea.vmem %s927_s2, %s716_s18  ;;  %708 = vmatprep.mubr.msk.bf16.mxu0 %vm494_vm0, %v245_v15  ;;  %537 = vmatprep.mubr.bf16.mxu1 %v244_v16 }
  0x11   : > { %v728_v10 = vld [vmem:[%s857_s21 + $0x4] ss:$8 sps:$4 sm:$0xff]   ;;  %v730_v13 = vld [vmem:[%s857_s21] ss:$8 sps:$4 sm:$0xff]   ;;  %v731_v14 = vld [vmem:[%s857_s21 + $0x14] ss:$8 sps:$4 sm:$0xff]  }
  0x12   : > { %505 = vmatprep.subr.bf16.mxu1 %v728_v10  ;;  %v733_v17 = vld [vmem:[%s857_s21 + $0x10] ss:$8 sps:$4 sm:$0xff]   ;;  %v734_v18 = vld [vmem:[%s857_s21 + $0x24] ss:$8 sps:$4 sm:$0xff]   ;;  %v736_v19 = vld [vmem:[%s857_s21 + $0x20] ss:$8 sps:$4 sm:$0xff]  }
  0x13   : > { %506 = vmatpush1.bf16.msra.mxu1 %v730_v13  ;;  %v737_v20 = vld [vmem:[%s857_s21 + $0x34] ss:$8 sps:$4 sm:$0xff]   ;;  %v749_v21 = vld [vmem:[%s857_s21 + $0x104] ss:$8 sps:$4 sm:$0xff]   ;;  %v739_v22 = vld [vmem:[%s857_s21 + $0x30] ss:$8 sps:$4 sm:$0xff]  }
  0x14   : > { %507 = vmatprep.subr.bf16.mxu1 %v731_v14  ;;  %v740_v23 = vld [vmem:[%s857_s21 + $0x44] ss:$8 sps:$4 sm:$0xff]   ;;  %v753_v24 = vld [vmem:[%s857_s21 + $0x100] ss:$8 sps:$4 sm:$0xff]   ;;  %546 = vmatprep.subr.bf16.mxu0 %v749_v21  ;;  %v755_v25 = vld [vmem:[%s857_s21 + $0x114] ss:$8 sps:$4 sm:$0xff]  }
  0x15   : > { %547 = vmatpush1.bf16.msra.mxu0 %v753_v24  ;;  %v742_v26 = vld [vmem:[%s857_s21 + $0x40] ss:$8 sps:$4 sm:$0xff]   ;;  %v759_v27 = vld [vmem:[%s857_s21 + $0x110] ss:$8 sps:$4 sm:$0xff]   ;;  %v761_v28 = vld [vmem:[%s857_s21 + $0x124] ss:$8 sps:$4 sm:$0xff]  }
  0x16   : > { %548 = vmatprep.subr.bf16.mxu0 %v755_v25  ;;  %v743_v29 = vld [vmem:[%s857_s21 + $0x54] ss:$8 sps:$4 sm:$0xff]   ;;  %v765_v30 = vld [vmem:[%s857_s21 + $0x120] ss:$8 sps:$4 sm:$0xff]   ;;  %v745_v32 = vld [vmem:[%s857_s21 + $0x50] ss:$8 sps:$4 sm:$0xff]  }
  0x17   : > { %508 = vmatpush1.bf16.msra.mxu1 %v733_v17  ;;  %v767_v31 = vld [vmem:[%s857_s21 + $0x134] ss:$8 sps:$4 sm:$0xff]   ;;  %v746_v33 = vld [vmem:[%s857_s21 + $0x64] ss:$8 sps:$4 sm:$0xff]   ;;  %v771_v34 = vld [vmem:[%s857_s21 + $0x130] ss:$8 sps:$4 sm:$0xff]  }
  0x18   : > { %509 = vmatprep.subr.bf16.mxu1 %v734_v18  ;;  %v773_v35 = vld [vmem:[%s857_s21 + $0x144] ss:$8 sps:$4 sm:$0xff]   ;;  %v748_v36 = vld [vmem:[%s857_s21 + $0x60] ss:$8 sps:$4 sm:$0xff]   ;;  %v751_v37 = vld [vmem:[%s857_s21 + $0x74] ss:$8 sps:$4 sm:$0xff]  }
  0x19   : > { %549 = vmatpush1.bf16.msra.mxu0 %v759_v27  ;;  %v777_v38 = vld [vmem:[%s857_s21 + $0x140] ss:$8 sps:$4 sm:$0xff]   ;;  %v779_v39 = vld [vmem:[%s857_s21 + $0x154] ss:$8 sps:$4 sm:$0xff]   ;;  %v754_v40 = vld [vmem:[%s857_s21 + $0x70] ss:$8 sps:$4 sm:$0xff]  }
  0x1a   : > { %550 = vmatprep.subr.bf16.mxu0 %v761_v28  ;;  %v757_v41 = vld [vmem:[%s857_s21 + $0x84] ss:$8 sps:$4 sm:$0xff]   ;;  %v783_v42 = vld [vmem:[%s857_s21 + $0x150] ss:$8 sps:$4 sm:$0xff]   ;;  %v760_v44 = vld [vmem:[%s857_s21 + $0x80] ss:$8 sps:$4 sm:$0xff]  }
  0x1b   : > { %510 = vmatpush1.bf16.msra.mxu1 %v736_v19  ;;  %v785_v43 = vld [vmem:[%s857_s21 + $0x164] ss:$8 sps:$4 sm:$0xff]   ;;  %v763_v45 = vld [vmem:[%s857_s21 + $0x94] ss:$8 sps:$4 sm:$0xff]   ;;  %v789_v46 = vld [vmem:[%s857_s21 + $0x160] ss:$8 sps:$4 sm:$0xff]  }
  0x1c   : > { %511 = vmatprep.subr.bf16.mxu1 %v737_v20  ;;  %v791_v47 = vld [vmem:[%s857_s21 + $0x174] ss:$8 sps:$4 sm:$0xff]   ;;  %v766_v48 = vld [vmem:[%s857_s21 + $0x90] ss:$8 sps:$4 sm:$0xff]   ;;  %v221_v49 = vld [vmem:[%s857_s21 + $0x180] sm:$0xff] }
  0x1d   : > { %551 = vmatpush1.bf16.msra.mxu0 %v765_v30  ;;  %v769_v50 = vld [vmem:[%s857_s21 + $0xa4] ss:$8 sps:$4 sm:$0xff]   ;;  %v795_v51 = vld [vmem:[%s857_s21 + $0x170] ss:$8 sps:$4 sm:$0xff]   ;;  %v706_v52 = vcombine.high %v221_v49, %v221_v49  ;;  %v705_v53 = vcombine.low %v221_v49, %v221_v49  ;;  %v772_v54 = vld [vmem:[%s857_s21 + $0xa0] ss:$8 sps:$4 sm:$0xff]  }
  0x1e   : > { %552 = vmatprep.subr.bf16.mxu0 %v767_v31  ;;  %v775_v55 = vld [vmem:[%s857_s21 + $0xb4] ss:$8 sps:$4 sm:$0xff]   ;;  %v778_v57 = vld [vmem:[%s857_s21 + $0xb0] ss:$8 sps:$4 sm:$0xff]   ;;  %v781_v58 = vld [vmem:[%s857_s21 + $0xc4] ss:$8 sps:$4 sm:$0xff]  }
  0x1f   : > { %512 = vmatpush1.bf16.msra.mxu1 %v739_v22  ;;  %v500_v56 = vsel %vm498_vm1, %v705_v53, 0  ;;  %v784_v59 = vld [vmem:[%s857_s21 + $0xc0] ss:$8 sps:$4 sm:$0xff]   ;;  %v787_v60 = vld [vmem:[%s857_s21 + $0xd4] ss:$8 sps:$4 sm:$0xff]  }
  0x20   : > { %513 = vmatprep.subr.bf16.mxu1 %v740_v23  ;;  %v790_v61 = vld [vmem:[%s857_s21 + $0xd0] ss:$8 sps:$4 sm:$0xff]   ;;  %v793_v62 = vld [vmem:[%s857_s21 + $0xe4] ss:$8 sps:$4 sm:$0xff]   ;;  %v796_v63 = vld [vmem:[%s857_s21 + $0xe0] ss:$8 sps:$4 sm:$0xff]  }
  0x21   : > { %553 = vmatpush1.bf16.msra.mxu0 %v771_v34  ;;  %v798_v0 = vld [vmem:[%s857_s21 + $0xf4] ss:$8 sps:$4 sm:$0xff]   ;;  %v801_v1 = vld [vmem:[%s857_s21 + $0xf0] ss:$8 sps:$4 sm:$0xff]  }
  0x22   : > { %554 = vmatprep.subr.bf16.mxu0 %v773_v35 }
  0x23   : > { %514 = vmatpush1.bf16.msra.mxu1 %v742_v26 }
  0x24   : > { %515 = vmatprep.subr.bf16.mxu1 %v743_v29 }
  0x25   : > { %555 = vmatpush1.bf16.msra.mxu0 %v777_v38 }
  0x26   : > { %556 = vmatprep.subr.bf16.mxu0 %v779_v39 }
  0x27   : > { %516 = vmatpush1.bf16.msra.mxu1 %v745_v32 }
  0x28   : > { %517 = vmatprep.subr.bf16.mxu1 %v746_v33 }
  0x29   : > { %557 = vmatpush1.bf16.msra.mxu0 %v783_v42 }
  0x2a   : > { %558 = vmatprep.subr.bf16.mxu0 %v785_v43 }
  0x2b   : > { %518 = vmatpush1.bf16.msra.mxu1 %v748_v36 }
  0x2c   : > { %519 = vmatprep.subr.bf16.mxu1 %v751_v37 }
  0x2d   : > { %559 = vmatpush1.bf16.msra.mxu0 %v789_v46 }
  0x2e   : > { %560 = vmatprep.subr.bf16.mxu0 %v791_v47 }
  0x2f   : > { %520 = vmatpush1.bf16.msra.mxu1 %v754_v40 }
  0x30   : > { %521 = vmatprep.subr.bf16.mxu1 %v757_v41 }
  0x31   : > { %561 = vmatpush1.bf16.msra.mxu0 %v795_v51 }
  0x32   : > { %707 = vmatprep.subr.msk.bf16.mxu0 %vm498_vm1, %v706_v52 }
  0x33   : > { %522 = vmatpush1.bf16.msra.mxu1 %v760_v44 }
  0x34   : > { %523 = vmatprep.subr.bf16.mxu1 %v763_v45 }
  0x35   : > { %563 = vmatpush1.bf16.msra.mxu0 %v500_v56 }
  0x37   : > { %524 = vmatpush1.bf16.msra.mxu1 %v766_v48 }
  0x38   : > { %525 = vmatprep.subr.bf16.mxu1 %v769_v50  ;;  %579 = vmatmul.mubr.bf16.vlgmr.msra.gmra.mrb[0].mxu0 %v860_v11 }
  0x3b   : > { %526 = vmatpush1.bf16.msra.mxu1 %v772_v54 }
  0x3c   : > { %527 = vmatprep.subr.bf16.mxu1 %v775_v55 }
  0x3f   : > { %528 = vmatpush1.bf16.msra.mxu1 %v778_v57 }
  0x40   : > { %529 = vmatprep.subr.bf16.mxu1 %v781_v58 }
  0x43   : > { %530 = vmatpush1.bf16.msra.mxu1 %v784_v59 }
  0x44   : > { %531 = vmatprep.subr.bf16.mxu1 %v787_v60 }
  0x47   : > { %532 = vmatpush1.bf16.msra.mxu1 %v790_v61 }
  0x48   : > { %533 = vmatprep.subr.bf16.mxu1 %v793_v62 }
  0x4b   : > { %534 = vmatpush1.bf16.msra.mxu1 %v796_v63 }
  0x4c   : > { %535 = vmatprep.subr.bf16.mxu1 %v798_v0 }
  0x4f   : > { %536 = vmatpush1.bf16.msra.mxu1 %v801_v1 }
  0x52   : > { %538 = vmatmul.mubr.bf16.vlgmr.msra.gmra.mrb[0].mxu1 %v862_v12 }
  0x86   : > { %v226_v6 = vpop.permute.xlu0 %225 }
 0x10b   : > { %v580_v2 = vpop.f32.mrb[0].mxu0 }
 0x10c   : > { %v582_v3 = vpop.f32.mrb[1].mxu0 }
 0x10d   : > { %v584_v4 = vpop.f32.mrb[2].mxu0 }
 0x10e   : > { %v585_v5 = vpop.f32.mrb[3].mxu0 }
 0x125   : > { %v539_v7 = vpop.f32.mrb[0].mxu1 }
 0x126   : > { %v540_v8 = vadd.f32 %v539_v7, %v226_v6  ;;  %v541_v9 = vpop.f32.mrb[1].mxu1 }
 0x127   : > { %v542_v10 = vadd.f32 %v541_v9, %v226_v6  ;;  %v543_v11 = vpop.f32.mrb[2].mxu1 }
 0x128   : > { %v581_v13 = vadd.f32 %v580_v2, %v540_v8  ;;  %v544_v14 = vpop.f32.mrb[3].mxu1 }
 0x129   : > { %v583_v15 = vadd.f32 %v582_v3, %v542_v10 }
 0x12a   : > { %803 = vtanh.f32 %v581_v13 }
 0x12b   : > { %805 = vtanh.f32 %v583_v15 }
 0x134   : > { %v804_v16 = vpop.eup %803 }
 0x135   : > { %v806_v17 = vpop.eup %805 }
 0x136   : > { %v591_v12 = vcombine.low %v804_v16, %v806_v17 }
 0x138   : > { %593 = vst [vmem:[%s170_s25] sm:$0x77] %v591_v12 }
 0x139 PF: > { %s13_s12 = sadd.s32 1, %s813_s12  }
 0x13a   : > { %p10_p4 = scmp.ge.s32.totalorder %s13_s12, 4  }
 0x13c   :  { %12 = sbr.rel (!%p10_p4) target bundleno = 1 (0x1), region = 62 }

</bundles_post_ra>
